<compile_context>
chip_gen: v5e
topology: v5e:2x2
jax: 0.10.0
libtpu: 0.0.40
codegen_flags: <defaults>
</compile_context>

<pallas_src>
import math
from functools import partial

import jax
import jax.numpy as jnp
from jax.experimental import pallas as pl
from jax.experimental.pallas import tpu as pltpu

BN_EPS = 1e-5
_VMEM_LIMIT = 32 * 1024 * 1024   # explicit scoped-VMEM budget with headroom for v7x (64 MiB/TC)


def _round_up(v, m):
    return (v + m - 1) // m * m


# ---------------------------------------------------------------------------
# kernels
# ---------------------------------------------------------------------------
def _lin1_kernel(x_ref, w1t_ref, h_ref):
    # h = x @ W1^T  (per-node linear; f32 compute, stored in the propagation compute dtype)
    h_ref[...] = jnp.dot(x_ref[...], w1t_ref[...],
                         preferred_element_type=jnp.float32).astype(h_ref.dtype)


def _prop_stats_kernel(a_ref, h_ref, o_ref, stats_ref, acc_ref):
    # grid = (row_tiles, k_tiles); K (reduction over A columns) is the minor/"arbitrary" axis.
    k = pl.program_id(1)

    @pl.when(k == 0)
    def _():
        acc_ref[...] = jnp.zeros_like(acc_ref)

    # bf16 (or f32) operands, f32 accumulation on the MXU.
    acc_ref[...] += jnp.dot(a_ref[...], h_ref[...], preferred_element_type=jnp.float32)

    @pl.when(k == pl.num_programs(1) - 1)
    def _():
        hp = acc_ref[...]
        o_ref[...] = hp.astype(o_ref.dtype)
        # Per-row-tile BN partials. Padded rows of A are zero -> hp padded rows are exact zeros
        # and contribute nothing; the finalize divides by the true N.
        st = jnp.concatenate([jnp.sum(hp, axis=0, keepdims=True),
                              jnp.sum(hp * hp, axis=0, keepdims=True)], axis=0)   # (2, C)
        stats_ref[0] = st


def _bn_apply_kernel(h_ref, ss_ref, o_ref):
    # BatchNorm folded into a single FMA: y = h * scale + shift
    o_ref[...] = (h_ref[...] * ss_ref[0:1, :] + ss_ref[1:2, :]).astype(o_ref.dtype)


# ---------------------------------------------------------------------------
# wrappers
# ---------------------------------------------------------------------------
def prepare_params(w1, gamma, beta):
    """One-time, call-path-external prep: transpose lin1 weight, pack the BN affine params."""
    w1t = jnp.asarray(w1, jnp.float32).T                       # [F_in, out_dim]
    gb = jnp.stack([jnp.asarray(gamma, jnp.float32),
                    jnp.asarray(beta, jnp.float32)], axis=0)   # [2, out_dim]
    return w1t, gb


@partial(jax.jit, static_argnames=("compute_dtype", "tile_rows", "tile_k"))
def symreg_forward(x, a_comb, w1t, gb, *,
                   compute_dtype=jnp.bfloat16, tile_rows=None, tile_k=None):
    """x: [N, F_in]; a_comb: [N, N] = A1 + coefi*A2 + coef2*A3 (gcn-normalized, dense);
    w1t: [F_in, out_dim] pre-transposed lin1.weight; gb: [2, out_dim] stacked (gamma, beta)."""
    n, f_in = x.shape
    c = w1t.shape[1]

    # ---- tile selection: row tiles multiple of 8; A's K tile 128-aligned or full width ----
    if tile_rows is None:
        tile_rows = 256 if n >= 256 else _round_up(n, 8)
    if tile_k is None:
        tile_k = 512 if n > 1024 else _round_up(n, tile_rows)
    n_pad = _round_up(n, (tile_rows * tile_k) // math.gcd(tile_rows, tile_k))
    assert tile_rows % 8 == 0 and n_pad % tile_rows == 0 and n_pad % tile_k == 0
    assert tile_k % 128 == 0 or tile_k == n_pad, "A tile last dim must be 128-aligned or full"
    n_rows = n_pad // tile_rows
    n_k = n_pad // tile_k

    f32 = jnp.float32
    x_pad = jnp.zeros((n_pad, f_in), f32).at[:n, :].set(x.astype(f32))
    a_pad = jnp.zeros((n_pad, n_pad), compute_dtype).at[:n, :n].set(a_comb.astype(compute_dtype))

    row_cp = pltpu.CompilerParams(dimension_semantics=("parallel",),
                                  vmem_limit_bytes=_VMEM_LIMIT)

    # ---- K0: h = x @ W1^T (row-tiled) ----
    h = pl.pallas_call(
        _lin1_kernel,
        out_shape=jax.ShapeDtypeStruct((n_pad, c), compute_dtype),
        grid=(n_rows,),
        in_specs=[pl.BlockSpec((tile_rows, f_in), lambda i: (i, 0)),
                  pl.BlockSpec((f_in, c), lambda i: (0, 0))],
        out_specs=pl.BlockSpec((tile_rows, c), lambda i: (i, 0)),
        compiler_params=row_cp,
    )(x_pad, w1t)

    # ---- K1: h_prop = A_comb @ h, plus per-row-tile BN partial sums ----
    h_prop, part = pl.pallas_call(
        _prop_stats_kernel,
        out_shape=(jax.ShapeDtypeStruct((n_pad, c), f32),
                   jax.ShapeDtypeStruct((n_rows, 2, c), f32)),
        grid=(n_rows, n_k),
        in_specs=[pl.BlockSpec((tile_rows, tile_k), lambda i, k: (i, k)),
                  pl.BlockSpec((tile_k, c), lambda i, k: (k, 0))],
        out_specs=(pl.BlockSpec((tile_rows, c), lambda i, k: (i, 0)),
                   pl.BlockSpec((1, 2, c), lambda i, k: (i, 0, 0))),
        scratch_shapes=[pltpu.VMEM((tile_rows, c), f32)],
        compiler_params=pltpu.CompilerParams(
            dimension_semantics=("parallel", "arbitrary"),
            vmem_limit_bytes=_VMEM_LIMIT),
    )(a_pad, h)
    # TODO(synk): for large sparse graphs, replace the dense A tiles with a block-sparse SpMM
    # (PrefetchScalarGridSpec, scalar-prefetched block row pointers / column ids) so only the
    # nonzero [tile_rows, tile_k] blocks of A are streamed from HBM.

    # ---- BN finalize (two-stage reduction tail; O(C) vector math) + affine fold ----
    sums = jnp.sum(part, axis=0)                          # [2, C]
    mean = sums[0] / n                                    # true N (zero-padded rows contribute 0)
    var = jnp.maximum(sums[1] / n - mean * mean, 0.0)     # biased variance (BN training mode)
    scale = gb[0] * jax.lax.rsqrt(var + BN_EPS)
    shift = gb[1] - mean * scale
    scale_shift = jnp.stack([scale, shift], axis=0)       # packed [2, C]

    # ---- K2: y = h_prop * scale + shift ----
    y = pl.pallas_call(
        _bn_apply_kernel,
        out_shape=jax.ShapeDtypeStruct((n_pad, c), f32),
        grid=(n_rows,),
        in_specs=[pl.BlockSpec((tile_rows, c), lambda i: (i, 0)),
                  pl.BlockSpec((2, c), lambda i: (0, 0))],
        out_specs=pl.BlockSpec((tile_rows, c), lambda i: (i, 0)),
        compiler_params=row_cp,
    )(h_prop, scale_shift)

    # dropout=False in the module -> skipped.
    return y[:n]


# ---------------------------------------------------------------------------
# graph glue + reference
# ---------------------------------------------------------------------------
def build_norm_adj(edge_index, edge_weight, num_nodes):
    """Dense equivalent of gcn_norm(..., add_self_loops=True) for 'add' aggregation:
    out = A_hat @ x with A_hat[i, j] = d[i]^-1/2 * w(j->i) * d[j]^-1/2, self-loops filled with 1.
    NOTE: duplicate self-loop edges are last-write-wins here (synthetic test edges are loop-free)."""
    row, col = edge_index[0], edge_index[1]
    e = row.shape[0]
    if edge_weight is None:
        edge_weight = jnp.ones((e,), jnp.float32)
    edge_weight = edge_weight.astype(jnp.float32)
    non_loop = row != col
    a = jnp.zeros((num_nodes, num_nodes), jnp.float32)
    a = a.at[col, row].add(jnp.where(non_loop, edge_weight, 0.0))
    diag = jnp.ones((num_nodes,), jnp.float32)       # add_remaining_self_loops fill_value = 1.0
    loop_idx = jnp.where(non_loop, num_nodes, row)   # out-of-range rows are dropped
    diag = diag.at[loop_idx].set(edge_weight, mode="drop")
    a = a + jnp.diag(diag)
    deg = a.sum(axis=1)
    dinv = jnp.where(deg > 0, 1.0 / jnp.sqrt(deg), 0.0)
    return a * dinv[:, None] * dinv[None, :]


def _reference(x, a_comb, w1, gamma, beta, eps=BN_EPS):
    hi = jax.lax.Precision.HIGHEST
    h = jnp.dot(x, w1.T, precision=hi)
    h = jnp.dot(a_comb, h, precision=hi)
    m = h.mean(0, keepdims=True)
    v = ((h - m) ** 2).mean(0, keepdims=True)
    return (h - m) / jnp.sqrt(v + eps) * gamma[None, :] + beta[None, :]


if __name__ == "__main__":
    key = jax.random.PRNGKey(0)
    # small but multi-tile shapes: 256 nodes, 16 input features, 8 output channels
    N, F_IN, OUT, E = 256, 16, 8, 1024
    ks = jax.random.split(key, 10)

    x = jax.random.normal(ks[0], (N, F_IN), jnp.float32)

    def rand_edges(k):
        k1, k2 = jax.random.split(k)
        src = jax.random.randint(k1, (E,), 0, N)
        dst = jax.random.randint(k2, (E,), 0, N)
        dst = jnp.where(dst == src, (dst + 1) % N, dst)   # keep synthetic edges loop-free
        return jnp.stack([src, dst]).astype(jnp.int32)

    edge_index = rand_edges(ks[1])
    edge_in = rand_edges(ks[2])
    edge_out = rand_edges(ks[3])
    in_w = jax.random.uniform(ks[4], (E,), jnp.float32, 0.1, 1.0)
    out_w = jax.random.uniform(ks[5], (E,), jnp.float32, 0.1, 1.0)

    # module parameters (shapes match the PyTorch layer); coefi/coef2 are init'd to 1.0
    w1 = 0.2 * jax.random.normal(ks[6], (OUT, F_IN), jnp.float32)   # lin1.weight [out_dim, input_dim]
    gamma = jnp.ones((OUT,), jnp.float32)                           # BatchNorm1d affine defaults
    beta = jnp.zeros((OUT,), jnp.float32)
    coef_i, coef_2 = 1.0, 1.0

    # graph glue: three gcn_norm'd dense adjacencies; x1 + coefi*x2 + coef2*x3 == A_comb @ h
    a_comb = (build_norm_adj(edge_index, None, N)
              + coef_i * build_norm_adj(edge_in, in_w, N)
              + coef_2 * build_norm_adj(edge_out, out_w, N))

    w1t, gb = prepare_params(w1, gamma, beta)   # one-time weight transpose + BN param packing
    y_ref = _reference(x, a_comb, w1, gamma, beta)

    # f32 path, auto tiles (single 256-row / 256-K block) -- strict semantic check
    y32 = jax.block_until_ready(symreg_forward(x, a_comb, w1t, gb, compute_dtype=jnp.float32))
    assert y32.shape == (N, OUT)
    assert jnp.allclose(y32, y_ref, atol=2e-3, rtol=2e-3), "f32 kernel mismatch vs reference"

    # bf16 A/h stream, multi-tile grid (4 row tiles x 2 K tiles) -- expected quantization error
    ybf = jax.block_until_ready(
        symreg_forward(x, a_comb, w1t, gb,
                       compute_dtype=jnp.bfloat16, tile_rows=64, tile_k=128))
    assert ybf.shape == (N, OUT)
    assert jnp.allclose(ybf, y_ref, atol=8e-2, rtol=8e-2), "bf16 kernel deviates too much"

    print("KERNEL_OK")
</pallas_src>

<mosaic_0001>
module attributes {stable_mosaic.version = 11 : i64} {
  func.func @_lin1_kernel(%arg0: i32, %arg1: memref<256x16xf32, #tpu.memory_space<vmem>>, %arg2: memref<16x8xf32, #tpu.memory_space<vmem>>, %arg3: memref<256x8xf32, #tpu.memory_space<vmem>>) attributes {dimension_semantics = [#tpu.dimension_semantics<parallel>], iteration_bounds = array<i64: 1>, scalar_prefetch = 0 : i64, scratch_operands = 0 : i64, tpu.core_type = #tpu.core_type<tc>, window_params = [{transform_indices = @transform_0, window_bounds = array<i64: 256, 16>}, {pipeline_mode = #tpu.pipeline_mode<synchronous>, transform_indices = @transform_1, window_bounds = array<i64: 16, 8>}, {transform_indices = @transform_2, window_bounds = array<i64: 256, 8>}]} {
    %c0 = arith.constant 0 : index
    %c0_0 = arith.constant 0 : index
    %0 = vector.load %arg1[%c0, %c0_0] : memref<256x16xf32, #tpu.memory_space<vmem>>, vector<256x16xf32>
    %c0_1 = arith.constant 0 : index
    %c0_2 = arith.constant 0 : index
    %1 = vector.load %arg2[%c0_1, %c0_2] : memref<16x8xf32, #tpu.memory_space<vmem>>, vector<16x8xf32>
    %cst = arith.constant dense<0.000000e+00> : vector<256x8xf32>
    %2 = tpu.matmul %0, %1, %cst {dimension_numbers = #tpu.dot_dimension_numbers<[1], [0], [0], [1], [0, 0, 1, 1], [], []>} : vector<256x16xf32>, vector<16x8xf32>, vector<256x8xf32> -> vector<256x8xf32>
    %c0_3 = arith.constant 0 : index
    %c0_4 = arith.constant 0 : index
    %3 = vector.load %arg3[%c0_3, %c0_4] : memref<256x8xf32, #tpu.memory_space<vmem>>, vector<256x8xf32>
    tpu.vector_store %arg3[%c0_3, %c0_4], %2 {strides = array<i32>} : memref<256x8xf32, #tpu.memory_space<vmem>>, vector<256x8xf32>,
    return
  }
  func.func @transform_0(%arg0: i32) -> (i32, i32) {
    %c0_i32 = arith.constant 0 : i32
    %c0_i32_0 = arith.constant 0 : i32
    return %arg0, %c0_i32 : i32, i32
  }
  func.func @transform_1(%arg0: i32) -> (i32, i32) {
    %c0_i32 = arith.constant 0 : i32
    %c0_i32_0 = arith.constant 0 : i32
    %c0_i32_1 = arith.constant 0 : i32
    return %c0_i32, %c0_i32_0 : i32, i32
  }
  func.func @transform_2(%arg0: i32) -> (i32, i32) {
    %c0_i32 = arith.constant 0 : i32
    %c0_i32_0 = arith.constant 0 : i32
    return %arg0, %c0_i32 : i32, i32
  }
}

module attributes {stable_mosaic.version = 11 : i64} {
  func.func @_prop_stats_kernel(%arg0: i32, %arg1: i32, %arg2: memref<256x256xf32, #tpu.memory_space<vmem>>, %arg3: memref<256x8xf32, #tpu.memory_space<vmem>>, %arg4: memref<256x8xf32, #tpu.memory_space<vmem>>, %arg5: memref<1x2x8xf32, #tpu.memory_space<vmem>>, %arg6: memref<256x8xf32, #tpu.memory_space<vmem>>) attributes {dimension_semantics = [#tpu.dimension_semantics<parallel>, #tpu.dimension_semantics<arbitrary>], iteration_bounds = array<i64: 1, 1>, scalar_prefetch = 0 : i64, scratch_operands = 1 : i64, tpu.core_type = #tpu.core_type<tc>, window_params = [{transform_indices = @transform_0, window_bounds = array<i64: 256, 256>}, {transform_indices = @transform_1, window_bounds = array<i64: 256, 8>}, {transform_indices = @transform_2, window_bounds = array<i64: 256, 8>}, {transform_indices = @transform_3, window_bounds = array<i64: 1, 2, 8>}]} {
    %c0_i32 = arith.constant 0 : i32
    %0 = arith.cmpi eq, %arg1, %c0_i32 : i32
    %1 = arith.extui %0 : i1 to i32
    %c0_i32_0 = arith.constant 0 : i32
    %2 = arith.cmpi ne, %1, %c0_i32_0 : i32
    scf.if %2 {
      %cst_10 = arith.constant 0.000000e+00 : f32
      %12 = vector.broadcast %cst_10 : f32 to vector<256x8xf32>
      %c0_11 = arith.constant 0 : index
      %c0_12 = arith.constant 0 : index
      %13 = vector.load %arg6[%c0_11, %c0_12] : memref<256x8xf32, #tpu.memory_space<vmem>>, vector<256x8xf32>
      tpu.vector_store %arg6[%c0_11, %c0_12], %12 {strides = array<i32>} : memref<256x8xf32, #tpu.memory_space<vmem>>, vector<256x8xf32>,
    } else {
    }
    %c0 = arith.constant 0 : index
    %c0_1 = arith.constant 0 : index
    %3 = vector.load %arg6[%c0, %c0_1] : memref<256x8xf32, #tpu.memory_space<vmem>>, vector<256x8xf32>
    %c0_2 = arith.constant 0 : index
    %c0_3 = arith.constant 0 : index
    %4 = vector.load %arg2[%c0_2, %c0_3] : memref<256x256xf32, #tpu.memory_space<vmem>>, vector<256x256xf32>
    %c0_4 = arith.constant 0 : index
    %c0_5 = arith.constant 0 : index
    %5 = vector.load %arg3[%c0_4, %c0_5] : memref<256x8xf32, #tpu.memory_space<vmem>>, vector<256x8xf32>
    %cst = arith.constant dense<0.000000e+00> : vector<256x8xf32>
    %6 = tpu.matmul %4, %5, %cst {dimension_numbers = #tpu.dot_dimension_numbers<[1], [0], [0], [1], [0, 0, 1, 1], [], []>} : vector<256x256xf32>, vector<256x8xf32>, vector<256x8xf32> -> vector<256x8xf32>
    %7 = arith.addf %3, %6 : vector<256x8xf32>
    %c0_6 = arith.constant 0 : index
    %c0_7 = arith.constant 0 : index
    %8 = vector.load %arg6[%c0_6, %c0_7] : memref<256x8xf32, #tpu.memory_space<vmem>>, vector<256x8xf32>
    tpu.vector_store %arg6[%c0_6, %c0_7], %7 {strides = array<i32>} : memref<256x8xf32, #tpu.memory_space<vmem>>, vector<256x8xf32>,
    %c0_i32_8 = arith.constant 0 : i32
    %9 = arith.cmpi eq, %arg1, %c0_i32_8 : i32
    %10 = arith.extui %9 : i1 to i32
    %c0_i32_9 = arith.constant 0 : i32
    %11 = arith.cmpi ne, %10, %c0_i32_9 : i32
    scf.if %11 {
      %c0_10 = arith.constant 0 : index
      %c0_11 = arith.constant 0 : index
      %12 = vector.load %arg6[%c0_10, %c0_11] : memref<256x8xf32, #tpu.memory_space<vmem>>, vector<256x8xf32>
      %c0_12 = arith.constant 0 : index
      %c0_13 = arith.constant 0 : index
      %13 = vector.load %arg4[%c0_12, %c0_13] : memref<256x8xf32, #tpu.memory_space<vmem>>, vector<256x8xf32>
      tpu.vector_store %arg4[%c0_12, %c0_13], %12 {strides = array<i32>} : memref<256x8xf32, #tpu.memory_space<vmem>>, vector<256x8xf32>,
      %cst_14 = arith.constant dense<0.000000e+00> : vector<8xf32>
      %14 = vector.multi_reduction <add>, %12, %cst_14 [0] : vector<256x8xf32> to vector<8xf32>
      %15 = vector.shape_cast %14 : vector<8xf32> to vector<1x8xf32>
      %16 = arith.mulf %12, %12 : vector<256x8xf32>
      %cst_15 = arith.constant dense<0.000000e+00> : vector<8xf32>
      %17 = vector.multi_reduction <add>, %16, %cst_15 [0] : vector<256x8xf32> to vector<8xf32>
      %18 = vector.shape_cast %17 : vector<8xf32> to vector<1x8xf32>
      %19 = tpu.concatenate %15, %18 in 0 : vector<1x8xf32>, vector<1x8xf32> -> vector<2x8xf32>
      %c0_16 = arith.constant 0 : index
      %c0_17 = arith.constant 0 : index
      %c0_18 = arith.constant 0 : index
      %20 = vector.load %arg5[%c0_16, %c0_17, %c0_18] : memref<1x2x8xf32, #tpu.memory_space<vmem>>, vector<1x2x8xf32>
      %21 = vector.shape_cast %20 : vector<1x2x8xf32> to vector<2x8xf32>
      %22 = vector.shape_cast %19 : vector<2x8xf32> to vector<1x2x8xf32>
      tpu.vector_store %arg5[%c0_16, %c0_17, %c0_18], %22 {strides = array<i32>} : memref<1x2x8xf32, #tpu.memory_space<vmem>>, vector<1x2x8xf32>,
    } else {
    }
    return
  }
  func.func @transform_0(%arg0: i32, %arg1: i32) -> (i32, i32) {
    %c0_i32 = arith.constant 0 : i32
    return %arg0, %arg1 : i32, i32
  }
  func.func @transform_1(%arg0: i32, %arg1: i32) -> (i32, i32) {
    %c0_i32 = arith.constant 0 : i32
    %c0_i32_0 = arith.constant 0 : i32
    return %arg1, %c0_i32 : i32, i32
  }
  func.func @transform_2(%arg0: i32, %arg1: i32) -> (i32, i32) {
    %c0_i32 = arith.constant 0 : i32
    %c0_i32_0 = arith.constant 0 : i32
    return %arg0, %c0_i32 : i32, i32
  }
  func.func @transform_3(%arg0: i32, %arg1: i32) -> (i32, i32, i32) {
    %c0_i32 = arith.constant 0 : i32
    %c0_i32_0 = arith.constant 0 : i32
    %c0_i32_1 = arith.constant 0 : i32
    return %arg0, %c0_i32, %c0_i32_0 : i32, i32, i32
  }
}

module attributes {stable_mosaic.version = 11 : i64} {
  func.func @_bn_apply_kernel(%arg0: i32, %arg1: memref<256x8xf32, #tpu.memory_space<vmem>>, %arg2: memref<2x8xf32, #tpu.memory_space<vmem>>, %arg3: memref<256x8xf32, #tpu.memory_space<vmem>>) attributes {dimension_semantics = [#tpu.dimension_semantics<parallel>], iteration_bounds = array<i64: 1>, scalar_prefetch = 0 : i64, scratch_operands = 0 : i64, tpu.core_type = #tpu.core_type<tc>, window_params = [{transform_indices = @transform_0, window_bounds = array<i64: 256, 8>}, {pipeline_mode = #tpu.pipeline_mode<synchronous>, transform_indices = @transform_1, window_bounds = array<i64: 2, 8>}, {transform_indices = @transform_2, window_bounds = array<i64: 256, 8>}]} {
    %c0 = arith.constant 0 : index
    %c0_0 = arith.constant 0 : index
    %0 = vector.load %arg1[%c0, %c0_0] : memref<256x8xf32, #tpu.memory_space<vmem>>, vector<256x8xf32>
    %c0_1 = arith.constant 0 : index
    %c0_2 = arith.constant 0 : index
    %1 = vector.load %arg2[%c0_1, %c0_2] : memref<2x8xf32, #tpu.memory_space<vmem>>, vector<1x8xf32>
    %2 = vector.broadcast %1 : vector<1x8xf32> to vector<256x8xf32>
    %3 = arith.mulf %0, %2 : vector<256x8xf32>
    %c1 = arith.constant 1 : index
    %c0_3 = arith.constant 0 : index
    %4 = vector.load %arg2[%c1, %c0_3] : memref<2x8xf32, #tpu.memory_space<vmem>>, vector<1x8xf32>
    %5 = vector.broadcast %4 : vector<1x8xf32> to vector<256x8xf32>
    %6 = arith.addf %3, %5 : vector<256x8xf32>
    %c0_4 = arith.constant 0 : index
    %c0_5 = arith.constant 0 : index
    %7 = vector.load %arg3[%c0_4, %c0_5] : memref<256x8xf32, #tpu.memory_space<vmem>>, vector<256x8xf32>
    tpu.vector_store %arg3[%c0_4, %c0_5], %6 {strides = array<i32>} : memref<256x8xf32, #tpu.memory_space<vmem>>, vector<256x8xf32>,
    return
  }
  func.func @transform_0(%arg0: i32) -> (i32, i32) {
    %c0_i32 = arith.constant 0 : i32
    %c0_i32_0 = arith.constant 0 : i32
    return %arg0, %c0_i32 : i32, i32
  }
  func.func @transform_1(%arg0: i32) -> (i32, i32) {
    %c0_i32 = arith.constant 0 : i32
    %c0_i32_0 = arith.constant 0 : i32
    %c0_i32_1 = arith.constant 0 : i32
    return %c0_i32, %c0_i32_0 : i32, i32
  }
  func.func @transform_2(%arg0: i32) -> (i32, i32) {
    %c0_i32 = arith.constant 0 : i32
    %c0_i32_0 = arith.constant 0 : i32
    return %arg0, %c0_i32 : i32, i32
  }
}

</mosaic_0001>

<bundles_post_ra>
// kernel: symreg_forward.3
= control target key start
LH: loop header
LB: loop body
LE: loop exit
PB: predicated region body
PF: predicated region fallthrough
CT: control target
= control target key end

     0   :  { %vm45_vm0 = vcmask 130048   ;;  %vm255_vm1 = vcmask 64512   ;;  %s607_s1 = inlined_call_operand.vmem [shape: f32[16,8], index: 1, kind: input, shape index: {}]   ;;  %s608_s0 = inlined_call_operand.vmem [shape: f32[256,16], index: 0, kind: input, shape index: {}]   ;;  %s609_s2 = inlined_call_operand.vmem [shape: f32[256,8], index: 2, kind: output, shape index: {}]  }
   0x1   :  { %v44_v0 = vld [vmem:[%s607_s1 + $0x8] sm:$0xff]  ;;  %v43_v1 = vld [vmem:[%s607_s1] sm:$0xff]  ;;  %v29_v10 = vld [vmem:[%s608_s0 + $0x90] sm:$0xff] }
   0x2   :  { %325 = vmatpush.msra.mxu2 %v44_v0  ;;  %326 = vmatpush.msra.mxu3 %v44_v0  ;;  %v27_v2 = vld [vmem:[%s608_s0 + $0x80] sm:$0xff]  ;;  %v28_v6 = vld [vmem:[%s608_s0 + $0x88] sm:$0xff]  ;;  %v37_v11 = vld [vmem:[%s608_s0 + $0xd0] sm:$0xff] }
   0x3   :  { %v35_v3 = vld [vmem:[%s608_s0 + $0xc0] sm:$0xff]  ;;  %156 = vmatpush.msra.mxu0 %v44_v0  ;;  %324 = vmatpush.msra.mxu1 %v44_v0  ;;  %v36_v7 = vld [vmem:[%s608_s0 + $0xc8] sm:$0xff]  ;;  %v13_v12 = vld [vmem:[%s608_s0 + $0x10] sm:$0xff] }
   0x4   :  { %328 = vmatpush.msra.mxu2 %v43_v1  ;;  %329 = vmatpush.msra.mxu3 %v43_v1  ;;  %v11_v4 = vld [vmem:[%s608_s0] sm:$0xff]  ;;  %v12_v8 = vld [vmem:[%s608_s0 + $0x8] sm:$0xff]  ;;  %v21_v13 = vld [vmem:[%s608_s0 + $0x50] sm:$0xff] }
   0x5   :  { %v19_v5 = vld [vmem:[%s608_s0 + $0x40] sm:$0xff]  ;;  %308 = vmatmul.msk.f32.vlgmr.msra.gmra.mxu2 %vm45_vm0, %v27_v2  ;;  %316 = vmatmul.msk.f32.vlgmr.msra.gmra.mxu3 %vm45_vm0, %v35_v3  ;;  %v20_v9 = vld [vmem:[%s608_s0 + $0x48] sm:$0xff]  ;;  %v30_v14 = vld [vmem:[%s608_s0 + $0x98] sm:$0xff] }
   0x6   :  { %157 = vmatpush.msra.mxu0 %v43_v1  ;;  %327 = vmatpush.msra.mxu1 %v43_v1  ;;  %v38_v15 = vld [vmem:[%s608_s0 + $0xd8] sm:$0xff]  ;;  %v31_v18 = vld [vmem:[%s608_s0 + $0xa0] sm:$0xff]  ;;  %v32_v22 = vld [vmem:[%s608_s0 + $0xa8] sm:$0xff] }
   0x7   :  { %292 = vmatmul.msk.f32.vlgmr.msra.gmra.mxu0 %vm45_vm0, %v11_v4  ;;  %300 = vmatmul.msk.f32.vlgmr.msra.gmra.mxu1 %vm45_vm0, %v19_v5  ;;  %v14_v16 = vld [vmem:[%s608_s0 + $0x18] sm:$0xff]  ;;  %v39_v19 = vld [vmem:[%s608_s0 + $0xe0] sm:$0xff]  ;;  %v40_v23 = vld [vmem:[%s608_s0 + $0xe8] sm:$0xff] }
   0x8   :  { %v22_v17 = vld [vmem:[%s608_s0 + $0x58] sm:$0xff]  ;;  %v15_v20 = vld [vmem:[%s608_s0 + $0x20] sm:$0xff]  ;;  %v16_v24 = vld [vmem:[%s608_s0 + $0x28] sm:$0xff] }
   0x9   :  { %v23_v21 = vld [vmem:[%s608_s0 + $0x60] sm:$0xff]  ;;  %v24_v25 = vld [vmem:[%s608_s0 + $0x68] sm:$0xff]  ;;  %v33_v26 = vld [vmem:[%s608_s0 + $0xb0] sm:$0xff] }
   0xa   :  { %v41_v27 = vld [vmem:[%s608_s0 + $0xf0] sm:$0xff]  ;;  %v34_v30 = vld [vmem:[%s608_s0 + $0xb8] sm:$0xff] }
   0xb   :  { %v17_v28 = vld [vmem:[%s608_s0 + $0x30] sm:$0xff]  ;;  %v42_v31 = vld [vmem:[%s608_s0 + $0xf8] sm:$0xff] }
   0xc   :  { %v25_v29 = vld [vmem:[%s608_s0 + $0x70] sm:$0xff]  ;;  %v18_v32 = vld [vmem:[%s608_s0 + $0x38] sm:$0xff] }
   0xd   :  { %309 = vmatmul.msk.f32.gmra.mxu2 %vm45_vm0, %v28_v6  ;;  %317 = vmatmul.msk.f32.gmra.mxu3 %vm45_vm0, %v36_v7  ;;  %v26_v33 = vld [vmem:[%s608_s0 + $0x78] sm:$0xff] }
   0xf   :  { %293 = vmatmul.msk.f32.gmra.mxu0 %vm45_vm0, %v12_v8  ;;  %301 = vmatmul.msk.f32.gmra.mxu1 %vm45_vm0, %v20_v9 }
  0x15   :  { %310 = vmatmul.msk.f32.gmra.mxu2 %vm45_vm0, %v29_v10  ;;  %318 = vmatmul.msk.f32.gmra.mxu3 %vm45_vm0, %v37_v11 }
  0x17   :  { %294 = vmatmul.msk.f32.gmra.mxu0 %vm45_vm0, %v13_v12  ;;  %302 = vmatmul.msk.f32.gmra.mxu1 %vm45_vm0, %v21_v13 }
  0x1d   :  { %311 = vmatmul.msk.f32.gmra.mxu2 %vm45_vm0, %v30_v14  ;;  %319 = vmatmul.msk.f32.gmra.mxu3 %vm45_vm0, %v38_v15 }
  0x1f   :  { %295 = vmatmul.msk.f32.gmra.mxu0 %vm45_vm0, %v14_v16  ;;  %303 = vmatmul.msk.f32.gmra.mxu1 %vm45_vm0, %v22_v17 }
  0x25   :  { %312 = vmatmul.msk.f32.gmra.mxu2 %vm45_vm0, %v31_v18  ;;  %320 = vmatmul.msk.f32.gmra.mxu3 %vm45_vm0, %v39_v19 }
  0x27   :  { %296 = vmatmul.msk.f32.gmra.mxu0 %vm45_vm0, %v15_v20  ;;  %304 = vmatmul.msk.f32.gmra.mxu1 %vm45_vm0, %v23_v21 }
  0x2d   :  { %313 = vmatmul.msk.f32.gmra.mxu2 %vm45_vm0, %v32_v22  ;;  %321 = vmatmul.msk.f32.gmra.mxu3 %vm45_vm0, %v40_v23 }
  0x2f   :  { %297 = vmatmul.msk.f32.gmra.mxu0 %vm45_vm0, %v16_v24  ;;  %305 = vmatmul.msk.f32.gmra.mxu1 %vm45_vm0, %v24_v25 }
  0x35   :  { %314 = vmatmul.msk.f32.gmra.mxu2 %vm45_vm0, %v33_v26  ;;  %322 = vmatmul.msk.f32.gmra.mxu3 %vm45_vm0, %v41_v27 }
  0x37   :  { %298 = vmatmul.msk.f32.gmra.mxu0 %vm45_vm0, %v17_v28  ;;  %306 = vmatmul.msk.f32.gmra.mxu1 %vm45_vm0, %v25_v29 }
  0x3d   :  { %315 = vmatmul.msk.f32.gmra.mxu2 %vm45_vm0, %v34_v30  ;;  %323 = vmatmul.msk.f32.gmra.mxu3 %vm45_vm0, %v42_v31 }
  0x3f   :  { %299 = vmatmul.msk.f32.gmra.mxu0 %vm45_vm0, %v18_v32  ;;  %307 = vmatmul.msk.f32.gmra.mxu1 %vm45_vm0, %v26_v33 }
  0x84   :  { %v159_v34 = vpop.f32.mrf.mxu0  ;;  %v183_v35 = vpop.f32.mrf.mxu1 }
  0x85   :  { %256 = vst.msk [vmem:[%s609_s2] sm:$0xff] %vm255_vm1, %v159_v34 }
  0x86   :  { %264 = vst.msk [vmem:[%s609_s2 + $0x40] sm:$0xff] %vm255_vm1, %v183_v35 }
  0x88   :  { %v207_v36 = vpop.f32.mrf.mxu2  ;;  %v231_v37 = vpop.f32.mrf.mxu3 }
  0x89   :  { %272 = vst.msk [vmem:[%s609_s2 + $0x80] sm:$0xff] %vm255_vm1, %v207_v36 }
  0x8a   :  { %280 = vst.msk [vmem:[%s609_s2 + $0xc0] sm:$0xff] %vm255_vm1, %v231_v37 }
  0x8c   :  { %v162_v38 = vpop.f32.mrf.mxu0  ;;  %v186_v39 = vpop.f32.mrf.mxu1 }
  0x8d   :  { %257 = vst.msk [vmem:[%s609_s2 + $0x8] sm:$0xff] %vm255_vm1, %v162_v38 }
  0x8e   :  { %265 = vst.msk [vmem:[%s609_s2 + $0x48] sm:$0xff] %vm255_vm1, %v186_v39 }
  0x90   :  { %v210_v40 = vpop.f32.mrf.mxu2  ;;  %v234_v41 = vpop.f32.mrf.mxu3 }
  0x91   :  { %273 = vst.msk [vmem:[%s609_s2 + $0x88] sm:$0xff] %vm255_vm1, %v210_v40 }
  0x92   :  { %281 = vst.msk [vmem:[%s609_s2 + $0xc8] sm:$0xff] %vm255_vm1, %v234_v41 }
  0x94   :  { %v165_v42 = vpop.f32.mrf.mxu0  ;;  %v189_v43 = vpop.f32.mrf.mxu1 }
  0x95   :  { %258 = vst.msk [vmem:[%s609_s2 + $0x10] sm:$0xff] %vm255_vm1, %v165_v42 }
  0x96   :  { %266 = vst.msk [vmem:[%s609_s2 + $0x50] sm:$0xff] %vm255_vm1, %v189_v43 }
  0x98   :  { %v213_v44 = vpop.f32.mrf.mxu2  ;;  %v237_v45 = vpop.f32.mrf.mxu3 }
  0x99   :  { %274 = vst.msk [vmem:[%s609_s2 + $0x90] sm:$0xff] %vm255_vm1, %v213_v44 }
  0x9a   :  { %282 = vst.msk [vmem:[%s609_s2 + $0xd0] sm:$0xff] %vm255_vm1, %v237_v45 }
  0x9c   :  { %v168_v46 = vpop.f32.mrf.mxu0  ;;  %v192_v47 = vpop.f32.mrf.mxu1 }
  0x9d   :  { %259 = vst.msk [vmem:[%s609_s2 + $0x18] sm:$0xff] %vm255_vm1, %v168_v46 }
  0x9e   :  { %267 = vst.msk [vmem:[%s609_s2 + $0x58] sm:$0xff] %vm255_vm1, %v192_v47 }
  0xa0   :  { %v216_v48 = vpop.f32.mrf.mxu2  ;;  %v240_v49 = vpop.f32.mrf.mxu3 }
  0xa1   :  { %275 = vst.msk [vmem:[%s609_s2 + $0x98] sm:$0xff] %vm255_vm1, %v216_v48 }
  0xa2   :  { %283 = vst.msk [vmem:[%s609_s2 + $0xd8] sm:$0xff] %vm255_vm1, %v240_v49 }
  0xa4   :  { %v171_v50 = vpop.f32.mrf.mxu0  ;;  %v195_v51 = vpop.f32.mrf.mxu1 }
  0xa5   :  { %260 = vst.msk [vmem:[%s609_s2 + $0x20] sm:$0xff] %vm255_vm1, %v171_v50 }
  0xa6   :  { %268 = vst.msk [vmem:[%s609_s2 + $0x60] sm:$0xff] %vm255_vm1, %v195_v51 }
  0xa8   :  { %v219_v52 = vpop.f32.mrf.mxu2  ;;  %v243_v53 = vpop.f32.mrf.mxu3 }
  0xa9   :  { %276 = vst.msk [vmem:[%s609_s2 + $0xa0] sm:$0xff] %vm255_vm1, %v219_v52 }
  0xaa   :  { %284 = vst.msk [vmem:[%s609_s2 + $0xe0] sm:$0xff] %vm255_vm1, %v243_v53 }
  0xac   :  { %v174_v54 = vpop.f32.mrf.mxu0  ;;  %v198_v55 = vpop.f32.mrf.mxu1 }
  0xad   :  { %261 = vst.msk [vmem:[%s609_s2 + $0x28] sm:$0xff] %vm255_vm1, %v174_v54 }
  0xae   :  { %269 = vst.msk [vmem:[%s609_s2 + $0x68] sm:$0xff] %vm255_vm1, %v198_v55 }
  0xb0   :  { %v222_v56 = vpop.f32.mrf.mxu2  ;;  %v246_v57 = vpop.f32.mrf.mxu3 }
  0xb1   :  { %277 = vst.msk [vmem:[%s609_s2 + $0xa8] sm:$0xff] %vm255_vm1, %v222_v56 }
  0xb2   :  { %285 = vst.msk [vmem:[%s609_s2 + $0xe8] sm:$0xff] %vm255_vm1, %v246_v57 }
  0xb4   :  { %v177_v58 = vpop.f32.mrf.mxu0  ;;  %v201_v59 = vpop.f32.mrf.mxu1 }
  0xb5   :  { %262 = vst.msk [vmem:[%s609_s2 + $0x30] sm:$0xff] %vm255_vm1, %v177_v58 }
  0xb6   :  { %270 = vst.msk [vmem:[%s609_s2 + $0x70] sm:$0xff] %vm255_vm1, %v201_v59 }
  0xb8   :  { %v225_v60 = vpop.f32.mrf.mxu2  ;;  %v249_v61 = vpop.f32.mrf.mxu3 }
  0xb9   :  { %278 = vst.msk [vmem:[%s609_s2 + $0xb0] sm:$0xff] %vm255_vm1, %v225_v60 }
  0xba   :  { %286 = vst.msk [vmem:[%s609_s2 + $0xf0] sm:$0xff] %vm255_vm1, %v249_v61 }
  0xbc   :  { %v180_v62 = vpop.f32.mrf.mxu0  ;;  %v204_v63 = vpop.f32.mrf.mxu1 }
  0xbd   :  { %263 = vst.msk [vmem:[%s609_s2 + $0x38] sm:$0xff] %vm255_vm1, %v180_v62 }
  0xbe   :  { %271 = vst.msk [vmem:[%s609_s2 + $0x78] sm:$0xff] %vm255_vm1, %v204_v63 }
  0xc0   :  { %v228_v0 = vpop.f32.mrf.mxu2  ;;  %v252_v1 = vpop.f32.mrf.mxu3 }
  0xc1   :  { %279 = vst.msk [vmem:[%s609_s2 + $0xb8] sm:$0xff] %vm255_vm1, %v228_v0 }
  0xc2   :  { %287 = vst.msk [vmem:[%s609_s2 + $0xf8] sm:$0xff] %vm255_vm1, %v252_v1 }

// kernel: symreg_forward.5
= control target key start
LH: loop header
LB: loop body
LE: loop exit
PB: predicated region body
PF: predicated region fallthrough
CT: control target
= control target key end

     0   :  { %vm111_vm0 = vcmask 64512   ;;  %s463_s0 = inlined_call_operand.vmem [shape: f32[256,8], index: 0, kind: input, shape index: {}]   ;;  %s464_s1 = inlined_call_operand.vmem [shape: f32[2,8], index: 1, kind: input, shape index: {}]   ;;  %s465_s2 = inlined_call_operand.vmem [shape: f32[256,8], index: 2, kind: output, shape index: {}]  }
   0x1   :  { %v11_v0 = vld [vmem:[%s463_s0] sm:$0xff]  ;;  %v12_v3 = vld [vmem:[%s463_s0 + $0x8] sm:$0xff]  ;;  %v13_v6 = vld [vmem:[%s463_s0 + $0x10] sm:$0xff] }
   0x2   :  { %v171_v1 = vld [vmem:[%s464_s1] ss:$0 sm:$0xff]  ;;  %v176_v2 = vld [vmem:[%s464_s1 + $0x1] ss:$0 sm:$0xff]  ;;  %v14_v7 = vld [vmem:[%s463_s0 + $0x18] sm:$0xff] }
   0x3   :  { %v45_v4 = vmul.f32 %v171_v1, %v11_v0  ;;  %v46_v5 = vmul.f32 %v171_v1, %v12_v3  ;;  %v15_v8 = vld [vmem:[%s463_s0 + $0x20] sm:$0xff]  ;;  %v47_v9 = vmul.f32 %v171_v1, %v13_v6  ;;  %v48_v10 = vmul.f32 %v171_v1, %v14_v7  ;;  %v16_v12 = vld [vmem:[%s463_s0 + $0x28] sm:$0xff]  ;;  %v17_v13 = vld [vmem:[%s463_s0 + $0x30] sm:$0xff] }
   0x4   :  { %v49_v11 = vmul.f32 %v171_v1, %v15_v8  ;;  %v18_v14 = vld [vmem:[%s463_s0 + $0x38] sm:$0xff]  ;;  %v50_v17 = vmul.f32 %v171_v1, %v16_v12  ;;  %v51_v18 = vmul.f32 %v171_v1, %v17_v13  ;;  %v19_v19 = vld [vmem:[%s463_s0 + $0x40] sm:$0xff]  ;;  %v20_v20 = vld [vmem:[%s463_s0 + $0x48] sm:$0xff] }
   0x5   :  { %v79_v15 = vadd.f32 %v176_v2, %v45_v4  ;;  %v80_v16 = vadd.f32 %v176_v2, %v46_v5  ;;  %v81_v21 = vadd.f32 %v176_v2, %v47_v9  ;;  %v82_v22 = vadd.f32 %v176_v2, %v48_v10  ;;  %v21_v24 = vld [vmem:[%s463_s0 + $0x50] sm:$0xff]  ;;  %v22_v27 = vld [vmem:[%s463_s0 + $0x58] sm:$0xff]  ;;  %v23_v30 = vld [vmem:[%s463_s0 + $0x60] sm:$0xff] }
   0x6   :  { %v52_v23 = vmul.f32 %v171_v1, %v18_v14  ;;  %v83_v25 = vadd.f32 %v176_v2, %v49_v11  ;;  %v53_v26 = vmul.f32 %v171_v1, %v19_v19  ;;  %v84_v28 = vadd.f32 %v176_v2, %v50_v17  ;;  %v24_v33 = vld [vmem:[%s463_s0 + $0x68] sm:$0xff]  ;;  %v25_v36 = vld [vmem:[%s463_s0 + $0x70] sm:$0xff]  ;;  %v26_v39 = vld [vmem:[%s463_s0 + $0x78] sm:$0xff] }
   0x7   :  { %112 = vst.msk [vmem:[%s465_s2] sm:$0xff] %vm111_vm0, %v79_v15  ;;  %v54_v29 = vmul.f32 %v171_v1, %v20_v20  ;;  %v85_v31 = vadd.f32 %v176_v2, %v51_v18  ;;  %v55_v32 = vmul.f32 %v171_v1, %v21_v24  ;;  %v56_v35 = vmul.f32 %v171_v1, %v22_v27  ;;  %v27_v42 = vld [vmem:[%s463_s0 + $0x80] sm:$0xff]  ;;  %v28_v45 = vld [vmem:[%s463_s0 + $0x88] sm:$0xff]  ;;  %v29_v48 = vld [vmem:[%s463_s0 + $0x90] sm:$0xff] }
   0x8   :  { %113 = vst.msk [vmem:[%s465_s2 + $0x8] sm:$0xff] %vm111_vm0, %v80_v16  ;;  %v86_v34 = vadd.f32 %v176_v2, %v52_v23  ;;  %v87_v37 = vadd.f32 %v176_v2, %v53_v26  ;;  %v57_v38 = vmul.f32 %v171_v1, %v23_v30  ;;  %v58_v41 = vmul.f32 %v171_v1, %v24_v33  ;;  %v30_v51 = vld [vmem:[%s463_s0 + $0x98] sm:$0xff]  ;;  %v31_v54 = vld [vmem:[%s463_s0 + $0xa0] sm:$0xff]  ;;  %v32_v57 = vld [vmem:[%s463_s0 + $0xa8] sm:$0xff] }
   0x9   :  { %114 = vst.msk [vmem:[%s465_s2 + $0x10] sm:$0xff] %vm111_vm0, %v81_v21  ;;  %v88_v40 = vadd.f32 %v176_v2, %v54_v29  ;;  %v89_v43 = vadd.f32 %v176_v2, %v55_v32  ;;  %v59_v44 = vmul.f32 %v171_v1, %v25_v36  ;;  %v90_v46 = vadd.f32 %v176_v2, %v56_v35  ;;  %v33_v60 = vld [vmem:[%s463_s0 + $0xb0] sm:$0xff]  ;;  %v34_v63 = vld [vmem:[%s463_s0 + $0xb8] sm:$0xff]  ;;  %v35_v4 = vld [vmem:[%s463_s0 + $0xc0] sm:$0xff] }
   0xa   :  { %115 = vst.msk [vmem:[%s465_s2 + $0x18] sm:$0xff] %vm111_vm0, %v82_v22  ;;  %v60_v47 = vmul.f32 %v171_v1, %v26_v39  ;;  %v91_v49 = vadd.f32 %v176_v2, %v57_v38  ;;  %v61_v50 = vmul.f32 %v171_v1, %v27_v42  ;;  %v92_v52 = vadd.f32 %v176_v2, %v58_v41  ;;  %v36_v7 = vld [vmem:[%s463_s0 + $0xc8] sm:$0xff]  ;;  %v37_v10 = vld [vmem:[%s463_s0 + $0xd0] sm:$0xff]  ;;  %v38_v13 = vld [vmem:[%s463_s0 + $0xd8] sm:$0xff] }
   0xb   :  { %116 = vst.msk [vmem:[%s465_s2 + $0x20] sm:$0xff] %vm111_vm0, %v83_v25  ;;  %v62_v53 = vmul.f32 %v171_v1, %v28_v45  ;;  %v93_v55 = vadd.f32 %v176_v2, %v59_v44  ;;  %v63_v56 = vmul.f32 %v171_v1, %v29_v48  ;;  %v64_v59 = vmul.f32 %v171_v1, %v30_v51  ;;  %v39_v16 = vld [vmem:[%s463_s0 + $0xe0] sm:$0xff]  ;;  %v40_v19 = vld [vmem:[%s463_s0 + $0xe8] sm:$0xff]  ;;  %v41_v22 = vld [vmem:[%s463_s0 + $0xf0] sm:$0xff] }
   0xc   :  { %117 = vst.msk [vmem:[%s465_s2 + $0x28] sm:$0xff] %vm111_vm0, %v84_v28  ;;  %v94_v58 = vadd.f32 %v176_v2, %v60_v47  ;;  %v95_v61 = vadd.f32 %v176_v2, %v61_v50  ;;  %v65_v62 = vmul.f32 %v171_v1, %v31_v54  ;;  %v66_v3 = vmul.f32 %v171_v1, %v32_v57  ;;  %v42_v25 = vld [vmem:[%s463_s0 + $0xf8] sm:$0xff] }
   0xd   :  { %118 = vst.msk [vmem:[%s465_s2 + $0x30] sm:$0xff] %vm111_vm0, %v85_v31  ;;  %v96_v0 = vadd.f32 %v176_v2, %v62_v53  ;;  %v97_v5 = vadd.f32 %v176_v2, %v63_v56  ;;  %v67_v6 = vmul.f32 %v171_v1, %v33_v60  ;;  %v98_v8 = vadd.f32 %v176_v2, %v64_v59 }
   0xe   :  { %119 = vst.msk [vmem:[%s465_s2 + $0x38] sm:$0xff] %vm111_vm0, %v86_v34  ;;  %v68_v9 = vmul.f32 %v171_v1, %v34_v63  ;;  %v99_v11 = vadd.f32 %v176_v2, %v65_v62  ;;  %v69_v12 = vmul.f32 %v171_v1, %v35_v4  ;;  %v100_v14 = vadd.f32 %v176_v2, %v66_v3 }
   0xf   :  { %120 = vst.msk [vmem:[%s465_s2 + $0x40] sm:$0xff] %vm111_vm0, %v87_v37  ;;  %v70_v15 = vmul.f32 %v171_v1, %v36_v7  ;;  %v101_v17 = vadd.f32 %v176_v2, %v67_v6  ;;  %v71_v18 = vmul.f32 %v171_v1, %v37_v10  ;;  %v72_v21 = vmul.f32 %v171_v1, %v38_v13 }
  0x10   :  { %121 = vst.msk [vmem:[%s465_s2 + $0x48] sm:$0xff] %vm111_vm0, %v88_v40  ;;  %v102_v20 = vadd.f32 %v176_v2, %v68_v9  ;;  %v103_v23 = vadd.f32 %v176_v2, %v69_v12  ;;  %v73_v24 = vmul.f32 %v171_v1, %v39_v16  ;;  %v74_v27 = vmul.f32 %v171_v1, %v40_v19 }
  0x11   :  { %122 = vst.msk [vmem:[%s465_s2 + $0x50] sm:$0xff] %vm111_vm0, %v89_v43  ;;  %v104_v26 = vadd.f32 %v176_v2, %v70_v15  ;;  %v105_v28 = vadd.f32 %v176_v2, %v71_v18  ;;  %v75_v29 = vmul.f32 %v171_v1, %v41_v22  ;;  %v106_v30 = vadd.f32 %v176_v2, %v72_v21 }
  0x12   :  { %123 = vst.msk [vmem:[%s465_s2 + $0x58] sm:$0xff] %vm111_vm0, %v90_v46  ;;  %v76_v31 = vmul.f32 %v171_v1, %v42_v25  ;;  %v107_v32 = vadd.f32 %v176_v2, %v73_v24  ;;  %v108_v33 = vadd.f32 %v176_v2, %v74_v27 }
  0x13   :  { %124 = vst.msk [vmem:[%s465_s2 + $0x60] sm:$0xff] %vm111_vm0, %v91_v49  ;;  %v109_v1 = vadd.f32 %v176_v2, %v75_v29 }
  0x14   :  { %125 = vst.msk [vmem:[%s465_s2 + $0x68] sm:$0xff] %vm111_vm0, %v92_v52  ;;  %v110_v34 = vadd.f32 %v176_v2, %v76_v31 }
  0x15   :  { %126 = vst.msk [vmem:[%s465_s2 + $0x70] sm:$0xff] %vm111_vm0, %v93_v55 }
  0x16   :  { %127 = vst.msk [vmem:[%s465_s2 + $0x78] sm:$0xff] %vm111_vm0, %v94_v58 }
  0x17   :  { %128 = vst.msk [vmem:[%s465_s2 + $0x80] sm:$0xff] %vm111_vm0, %v95_v61 }
  0x18   :  { %129 = vst.msk [vmem:[%s465_s2 + $0x88] sm:$0xff] %vm111_vm0, %v96_v0 }
  0x19   :  { %130 = vst.msk [vmem:[%s465_s2 + $0x90] sm:$0xff] %vm111_vm0, %v97_v5 }
  0x1a   :  { %131 = vst.msk [vmem:[%s465_s2 + $0x98] sm:$0xff] %vm111_vm0, %v98_v8 }
  0x1b   :  { %132 = vst.msk [vmem:[%s465_s2 + $0xa0] sm:$0xff] %vm111_vm0, %v99_v11 }
  0x1c   :  { %133 = vst.msk [vmem:[%s465_s2 + $0xa8] sm:$0xff] %vm111_vm0, %v100_v14 }
  0x1d   :  { %134 = vst.msk [vmem:[%s465_s2 + $0xb0] sm:$0xff] %vm111_vm0, %v101_v17 }
  0x1e   :  { %135 = vst.msk [vmem:[%s465_s2 + $0xb8] sm:$0xff] %vm111_vm0, %v102_v20 }
  0x1f   :  { %136 = vst.msk [vmem:[%s465_s2 + $0xc0] sm:$0xff] %vm111_vm0, %v103_v23 }
  0x20   :  { %137 = vst.msk [vmem:[%s465_s2 + $0xc8] sm:$0xff] %vm111_vm0, %v104_v26 }
  0x21   :  { %138 = vst.msk [vmem:[%s465_s2 + $0xd0] sm:$0xff] %vm111_vm0, %v105_v28 }
  0x22   :  { %139 = vst.msk [vmem:[%s465_s2 + $0xd8] sm:$0xff] %vm111_vm0, %v106_v30 }
  0x23   :  { %140 = vst.msk [vmem:[%s465_s2 + $0xe0] sm:$0xff] %vm111_vm0, %v107_v32 }
  0x24   :  { %141 = vst.msk [vmem:[%s465_s2 + $0xe8] sm:$0xff] %vm111_vm0, %v108_v33 }
  0x25   :  { %142 = vst.msk [vmem:[%s465_s2 + $0xf0] sm:$0xff] %vm111_vm0, %v109_v1 }
  0x26   :  { %143 = vst.msk [vmem:[%s465_s2 + $0xf8] sm:$0xff] %vm111_vm0, %v110_v34 }

// kernel: symreg_forward.4
= control target key start
LH: loop header
LB: loop body
LE: loop exit
PB: predicated region body
PF: predicated region fallthrough
CT: control target
= control target key end

     0   :  { %9 = vsyncpa [#allocation4], 0  ;;  %s797_s15 = smov [#allocation3]   ;;  %s798_s17 = smov 256   ;;  %s1323_s0 = inlined_call_operand.hbm [shape: f32[256,256], index: 0, kind: input, shape index: {}]   ;;  %s1324_s1 = inlined_call_operand.vmem [shape: f32[256,8], index: 1, kind: input, shape index: {}]   ;;  %s1325_s2 = inlined_call_operand.vmem [shape: f32[256,8], index: 2, kind: output, shape index: {0}]   ;;  %s1326_s3 = inlined_call_operand.vmem [shape: f32[1,2,8], index: 3, kind: output, shape index: {1}]  }
   0x1   :  { %s14_s14 = sshll.u32 %s1323_s0, 4  ;;  %s16_s16 = sshll.u32 %s797_s15, 4  ;;  %s15_s14 = int_to_ptr.hbm [resolvable:$true] %s14_s14  ;;  %s17_s16 = int_to_ptr.vmem [resolvable:$true] %s16_s16 }
   0x2   :  { %s799_s18 = smov 16  }
   0x3   :  { %22 = dma.hbm_to_vmem [thread:$0]  %s15_s14, 8192, %s17_s16, [#allocation4], %s798_s17, %s798_s17, %s799_s18  }
   0x4   :  { %795 = dma.done.wait [#allocation4], 8192  }
   0x5   :  { %796 = vsyncadd [#allocation4], 4294959104  ;;  %v177_v0 = vld [vmem:[%s1324_s1 + $0x78] sm:$0xff]  ;;  %v176_v2 = vld [vmem:[%s1324_s1 + $0x70] sm:$0xff]  ;;  %vm33_vm0 = vcmask 64512   ;;  %vm722_vm1 = vcmask 1040384  }
   0x6   :  { %v193_v1 = vld [vmem:[%s1324_s1 + $0xf8] sm:$0xff]  ;;  %194 = vmatpush.msra.mxu0 %v177_v0  ;;  %v192_v3 = vld [vmem:[%s1324_s1 + $0xf0] sm:$0xff]  ;;  %v175_v4 = vld [vmem:[%s1324_s1 + $0x68] sm:$0xff]  ;;  %735 = vmatpush.msra.mxu2 %v177_v0  ;;  %vm724_vm2 = vcmask 58368  }
   0x7   :  { %307 = vmatpush.msra.mxu1 %v193_v1  ;;  %v191_v5 = vld [vmem:[%s1324_s1 + $0xe8] sm:$0xff]  ;;  %751 = vmatpush.msra.mxu3 %v193_v1  ;;  %v174_v6 = vld [vmem:[%s1324_s1 + $0x60] sm:$0xff]  ;;  %v173_v8 = vld [vmem:[%s1324_s1 + $0x58] sm:$0xff] }
   0x8   :  { %195 = vmatpush.msra.mxu0 %v176_v2  ;;  %v190_v7 = vld [vmem:[%s1324_s1 + $0xe0] sm:$0xff]  ;;  %736 = vmatpush.msra.mxu2 %v176_v2  ;;  %v189_v9 = vld [vmem:[%s1324_s1 + $0xd8] sm:$0xff]  ;;  %v172_v10 = vld [vmem:[%s1324_s1 + $0x50] sm:$0xff] }
   0x9   :  { %308 = vmatpush.msra.mxu1 %v192_v3  ;;  %752 = vmatpush.msra.mxu3 %v192_v3  ;;  %v188_v11 = vld [vmem:[%s1324_s1 + $0xd0] sm:$0xff]  ;;  %v171_v12 = vld [vmem:[%s1324_s1 + $0x48] sm:$0xff]  ;;  %v170_v14 = vld [vmem:[%s1324_s1 + $0x40] sm:$0xff] }
   0xa   :  { %196 = vmatpush.msra.mxu0 %v175_v4  ;;  %737 = vmatpush.msra.mxu2 %v175_v4  ;;  %v187_v13 = vld [vmem:[%s1324_s1 + $0xc8] sm:$0xff]  ;;  %v186_v15 = vld [vmem:[%s1324_s1 + $0xc0] sm:$0xff]  ;;  %v169_v16 = vld [vmem:[%s1324_s1 + $0x38] sm:$0xff] }
   0xb   :  { %309 = vmatpush.msra.mxu1 %v191_v5  ;;  %753 = vmatpush.msra.mxu3 %v191_v5  ;;  %v185_v17 = vld [vmem:[%s1324_s1 + $0xb8] sm:$0xff]  ;;  %v168_v18 = vld [vmem:[%s1324_s1 + $0x30] sm:$0xff]  ;;  %v167_v20 = vld [vmem:[%s1324_s1 + $0x28] sm:$0xff] }
   0xc   :  { %197 = vmatpush.msra.mxu0 %v174_v6  ;;  %738 = vmatpush.msra.mxu2 %v174_v6  ;;  %v184_v19 = vld [vmem:[%s1324_s1 + $0xb0] sm:$0xff]  ;;  %v183_v21 = vld [vmem:[%s1324_s1 + $0xa8] sm:$0xff]  ;;  %v166_v22 = vld [vmem:[%s1324_s1 + $0x20] sm:$0xff] }
   0xd   :  { %310 = vmatpush.msra.mxu1 %v190_v7  ;;  %754 = vmatpush.msra.mxu3 %v190_v7  ;;  %v182_v23 = vld [vmem:[%s1324_s1 + $0xa0] sm:$0xff]  ;;  %v165_v24 = vld [vmem:[%s1324_s1 + $0x18] sm:$0xff]  ;;  %v164_v26 = vld [vmem:[%s1324_s1 + $0x10] sm:$0xff] }
   0xe   :  { %198 = vmatpush.msra.mxu0 %v173_v8  ;;  %739 = vmatpush.msra.mxu2 %v173_v8  ;;  %v181_v25 = vld [vmem:[%s1324_s1 + $0x98] sm:$0xff]  ;;  %v180_v27 = vld [vmem:[%s1324_s1 + $0x90] sm:$0xff]  ;;  %v163_v28 = vld [vmem:[%s1324_s1 + $0x8] sm:$0xff] }
   0xf   :  { %311 = vmatpush.msra.mxu1 %v189_v9  ;;  %755 = vmatpush.msra.mxu3 %v189_v9  ;;  %v179_v29 = vld [vmem:[%s1324_s1 + $0x88] sm:$0xff]  ;;  %v162_v30 = vld [vmem:[%s1324_s1] sm:$0xff]  ;;  %v100_v36 = vld [vmem:[#allocation3 + $0x10] sm:$0xff] }
  0x10   :  { %199 = vmatpush.msra.mxu0 %v172_v10  ;;  %740 = vmatpush.msra.mxu2 %v172_v10  ;;  %v178_v31 = vld [vmem:[%s1324_s1 + $0x80] sm:$0xff]  ;;  %v99_v33 = vld [vmem:[#allocation3 + $0x8] sm:$0xff]  ;;  %v101_v37 = vld [vmem:[#allocation3 + $0x18] sm:$0xff] }
  0x11   :  { %312 = vmatpush.msra.mxu1 %v188_v11  ;;  %756 = vmatpush.msra.mxu3 %v188_v11  ;;  %v98_v32 = vld [vmem:[#allocation3] sm:$0xff]  ;;  %v131_v35 = vld [vmem:[#allocation3 + $0x108] sm:$0xff]  ;;  %v132_v38 = vld [vmem:[#allocation3 + $0x110] sm:$0xff] }
  0x12   :  { %200 = vmatpush.msra.mxu0 %v171_v12  ;;  %741 = vmatpush.msra.mxu2 %v171_v12  ;;  %v130_v34 = vld [vmem:[#allocation3 + $0x100] sm:$0xff]  ;;  %v133_v39 = vld [vmem:[#allocation3 + $0x118] sm:$0xff]  ;;  %v103_v41 = vld [vmem:[#allocation3 + $0x28] sm:$0xff] }
  0x13   :  { %313 = vmatpush.msra.mxu1 %v187_v13  ;;  %757 = vmatpush.msra.mxu3 %v187_v13  ;;  %v102_v40 = vld [vmem:[#allocation3 + $0x20] sm:$0xff]  ;;  %v135_v43 = vld [vmem:[#allocation3 + $0x128] sm:$0xff]  ;;  %v104_v44 = vld [vmem:[#allocation3 + $0x30] sm:$0xff] }
  0x14   :  { %201 = vmatpush.msra.mxu0 %v170_v14  ;;  %742 = vmatpush.msra.mxu2 %v170_v14  ;;  %v134_v42 = vld [vmem:[#allocation3 + $0x120] sm:$0xff]  ;;  %v105_v45 = vld [vmem:[#allocation3 + $0x38] sm:$0xff]  ;;  %v136_v46 = vld [vmem:[#allocation3 + $0x130] sm:$0xff] }
  0x15   :  { %314 = vmatpush.msra.mxu1 %v186_v15  ;;  %758 = vmatpush.msra.mxu3 %v186_v15  ;;  %v137_v47 = vld [vmem:[#allocation3 + $0x138] sm:$0xff]  ;;  %v106_v48 = vld [vmem:[#allocation3 + $0x40] sm:$0xff]  ;;  %v107_v49 = vld [vmem:[#allocation3 + $0x48] sm:$0xff] }
  0x16   :  { %202 = vmatpush.msra.mxu0 %v169_v16  ;;  %743 = vmatpush.msra.mxu2 %v169_v16  ;;  %v138_v50 = vld [vmem:[#allocation3 + $0x140] sm:$0xff]  ;;  %v139_v51 = vld [vmem:[#allocation3 + $0x148] sm:$0xff]  ;;  %v108_v52 = vld [vmem:[#allocation3 + $0x50] sm:$0xff]  ;;  %v800_v16 = vmov 0.0  }
  0x17   :  { %315 = vmatpush.msra.mxu1 %v185_v17  ;;  %759 = vmatpush.msra.mxu3 %v185_v17  ;;  %v109_v53 = vld [vmem:[#allocation3 + $0x58] sm:$0xff]  ;;  %v140_v54 = vld [vmem:[#allocation3 + $0x150] sm:$0xff]  ;;  %v110_v56 = vld [vmem:[#allocation3 + $0x60] sm:$0xff]  ;;  %34 = vst.msk [vmem:[#allocation2] sm:$0xff] %vm33_vm0, %v800_v16 }
  0x18   :  { %203 = vmatpush.msra.mxu0 %v168_v18  ;;  %744 = vmatpush.msra.mxu2 %v168_v18  ;;  %v141_v55 = vld [vmem:[#allocation3 + $0x158] sm:$0xff]  ;;  %v111_v57 = vld [vmem:[#allocation3 + $0x68] sm:$0xff]  ;;  %v142_v58 = vld [vmem:[#allocation3 + $0x160] sm:$0xff]  ;;  %35 = vst.msk [vmem:[#allocation2 + $0x8] sm:$0xff] %vm33_vm0, %v800_v16 }
  0x19   :  { %316 = vmatpush.msra.mxu1 %v184_v19  ;;  %760 = vmatpush.msra.mxu3 %v184_v19  ;;  %v143_v59 = vld [vmem:[#allocation3 + $0x168] sm:$0xff]  ;;  %v112_v60 = vld [vmem:[#allocation3 + $0x70] sm:$0xff]  ;;  %v113_v61 = vld [vmem:[#allocation3 + $0x78] sm:$0xff]  ;;  %36 = vst.msk [vmem:[#allocation2 + $0x10] sm:$0xff] %vm33_vm0, %v800_v16 }
  0x1a   :  { %204 = vmatpush.msra.mxu0 %v167_v20  ;;  %745 = vmatpush.msra.mxu2 %v167_v20  ;;  %v144_v62 = vld [vmem:[#allocation3 + $0x170] sm:$0xff]  ;;  %v145_v63 = vld [vmem:[#allocation3 + $0x178] sm:$0xff]  ;;  %v114_v0 = vld [vmem:[#allocation3 + $0x80] sm:$0xff]  ;;  %37 = vst.msk [vmem:[#allocation2 + $0x18] sm:$0xff] %vm33_vm0, %v800_v16 }
  0x1b   :  { %317 = vmatpush.msra.mxu1 %v183_v21  ;;  %761 = vmatpush.msra.mxu3 %v183_v21  ;;  %v115_v1 = vld [vmem:[#allocation3 + $0x88] sm:$0xff]  ;;  %v146_v2 = vld [vmem:[#allocation3 + $0x180] sm:$0xff]  ;;  %v116_v4 = vld [vmem:[#allocation3 + $0x90] sm:$0xff]  ;;  %38 = vst.msk [vmem:[#allocation2 + $0x20] sm:$0xff] %vm33_vm0, %v800_v16 }
  0x1c   :  { %205 = vmatpush.msra.mxu0 %v166_v22  ;;  %746 = vmatpush.msra.mxu2 %v166_v22  ;;  %v147_v3 = vld [vmem:[#allocation3 + $0x188] sm:$0xff]  ;;  %v117_v5 = vld [vmem:[#allocation3 + $0x98] sm:$0xff]  ;;  %v148_v6 = vld [vmem:[#allocation3 + $0x190] sm:$0xff]  ;;  %39 = vst.msk [vmem:[#allocation2 + $0x28] sm:$0xff] %vm33_vm0, %v800_v16 }
  0x1d   :  { %318 = vmatpush.msra.mxu1 %v182_v23  ;;  %762 = vmatpush.msra.mxu3 %v182_v23  ;;  %v149_v7 = vld [vmem:[#allocation3 + $0x198] sm:$0xff]  ;;  %v118_v8 = vld [vmem:[#allocation3 + $0xa0] sm:$0xff]  ;;  %v119_v9 = vld [vmem:[#allocation3 + $0xa8] sm:$0xff]  ;;  %40 = vst.msk [vmem:[#allocation2 + $0x30] sm:$0xff] %vm33_vm0, %v800_v16 }
  0x1e   :  { %206 = vmatpush.msra.mxu0 %v165_v24  ;;  %747 = vmatpush.msra.mxu2 %v165_v24  ;;  %v150_v10 = vld [vmem:[#allocation3 + $0x1a0] sm:$0xff]  ;;  %v151_v11 = vld [vmem:[#allocation3 + $0x1a8] sm:$0xff]  ;;  %v120_v12 = vld [vmem:[#allocation3 + $0xb0] sm:$0xff]  ;;  %41 = vst.msk [vmem:[#allocation2 + $0x38] sm:$0xff] %vm33_vm0, %v800_v16 }
  0x1f   :  { %319 = vmatpush.msra.mxu1 %v181_v25  ;;  %763 = vmatpush.msra.mxu3 %v181_v25  ;;  %v121_v13 = vld [vmem:[#allocation3 + $0xb8] sm:$0xff]  ;;  %v152_v14 = vld [vmem:[#allocation3 + $0x1b0] sm:$0xff]  ;;  %v122_v17 = vld [vmem:[#allocation3 + $0xc0] sm:$0xff]  ;;  %42 = vst.msk [vmem:[#allocation2 + $0x40] sm:$0xff] %vm33_vm0, %v800_v16 }
  0x20   :  { %207 = vmatpush.msra.mxu0 %v164_v26  ;;  %748 = vmatpush.msra.mxu2 %v164_v26  ;;  %v153_v15 = vld [vmem:[#allocation3 + $0x1b8] sm:$0xff]  ;;  %v123_v18 = vld [vmem:[#allocation3 + $0xc8] sm:$0xff]  ;;  %v154_v19 = vld [vmem:[#allocation3 + $0x1c0] sm:$0xff]  ;;  %43 = vst.msk [vmem:[#allocation2 + $0x48] sm:$0xff] %vm33_vm0, %v800_v16 }
  0x21   :  { %320 = vmatpush.msra.mxu1 %v180_v27  ;;  %764 = vmatpush.msra.mxu3 %v180_v27  ;;  %v155_v20 = vld [vmem:[#allocation3 + $0x1c8] sm:$0xff]  ;;  %44 = vst.msk [vmem:[#allocation2 + $0x50] sm:$0xff] %vm33_vm0, %v800_v16  ;;  %v124_v21 = vld [vmem:[#allocation3 + $0xd0] sm:$0xff]  ;;  %v125_v22 = vld [vmem:[#allocation3 + $0xd8] sm:$0xff] }
  0x22   :  { %208 = vmatpush.msra.mxu0 %v163_v28  ;;  %749 = vmatpush.msra.mxu2 %v163_v28  ;;  %45 = vst.msk [vmem:[#allocation2 + $0x58] sm:$0xff] %vm33_vm0, %v800_v16  ;;  %v156_v23 = vld [vmem:[#allocation3 + $0x1d0] sm:$0xff]  ;;  %v157_v24 = vld [vmem:[#allocation3 + $0x1d8] sm:$0xff]  ;;  %v126_v25 = vld [vmem:[#allocation3 + $0xe0] sm:$0xff] }
  0x23   :  { %321 = vmatpush.msra.mxu1 %v179_v29  ;;  %765 = vmatpush.msra.mxu3 %v179_v29  ;;  %46 = vst.msk [vmem:[#allocation2 + $0x60] sm:$0xff] %vm33_vm0, %v800_v16  ;;  %v127_v26 = vld [vmem:[#allocation3 + $0xe8] sm:$0xff]  ;;  %v158_v27 = vld [vmem:[#allocation3 + $0x1e0] sm:$0xff]  ;;  %v128_v29 = vld [vmem:[#allocation3 + $0xf0] sm:$0xff] }
  0x24   :  { %209 = vmatpush.msra.mxu0 %v162_v30  ;;  %750 = vmatpush.msra.mxu2 %v162_v30  ;;  %47 = vst.msk [vmem:[#allocation2 + $0x68] sm:$0xff] %vm33_vm0, %v800_v16  ;;  %v159_v28 = vld [vmem:[#allocation3 + $0x1e8] sm:$0xff]  ;;  %v129_v30 = vld [vmem:[#allocation3 + $0xf8] sm:$0xff] }
  0x25   :  { %322 = vmatpush.msra.mxu1 %v178_v31  ;;  %210 = vmatmul.f32.vlgmr.msra.gmra.mxu0 %v98_v32  ;;  %48 = vst.msk [vmem:[#allocation2 + $0x70] sm:$0xff] %vm33_vm0, %v800_v16  ;;  %v161_v32 = vld [vmem:[#allocation3 + $0x1f8] sm:$0xff] }
  0x26   :  { %323 = vmatmul.f32.vlgmr.msra.gmra.mxu1 %v99_v33  ;;  %766 = vmatpush.msra.mxu3 %v178_v31  ;;  %49 = vst.msk [vmem:[#allocation2 + $0x78] sm:$0xff] %vm33_vm0, %v800_v16  ;;  %v160_v31 = vld [vmem:[#allocation3 + $0x1f0] sm:$0xff] }
  0x27   :  { %258 = vmatmul.f32.vlgmr.msra.gmra.mxu2 %v130_v34  ;;  %371 = vmatmul.f32.vlgmr.msra.gmra.mxu3 %v131_v35  ;;  %50 = vst.msk [vmem:[#allocation2 + $0x80] sm:$0xff] %vm33_vm0, %v800_v16  ;;  %v66_v34 = vld [vmem:[#allocation2] sm:$0xff] }
  0x28   :  { %51 = vst.msk [vmem:[#allocation2 + $0x88] sm:$0xff] %vm33_vm0, %v800_v16 }
  0x29   :  { %52 = vst.msk [vmem:[#allocation2 + $0x90] sm:$0xff] %vm33_vm0, %v800_v16 }
  0x2a   :  { %53 = vst.msk [vmem:[#allocation2 + $0x98] sm:$0xff] %vm33_vm0, %v800_v16 }
  0x2b   :  { %54 = vst.msk [vmem:[#allocation2 + $0xa0] sm:$0xff] %vm33_vm0, %v800_v16 }
  0x2c   :  { %55 = vst.msk [vmem:[#allocation2 + $0xa8] sm:$0xff] %vm33_vm0, %v800_v16 }
  0x2d   :  { %213 = vmatmul.f32.gmra.mxu0 %v100_v36  ;;  %56 = vst.msk [vmem:[#allocation2 + $0xb0] sm:$0xff] %vm33_vm0, %v800_v16 }
  0x2e   :  { %326 = vmatmul.f32.gmra.mxu1 %v101_v37  ;;  %57 = vst.msk [vmem:[#allocation2 + $0xb8] sm:$0xff] %vm33_vm0, %v800_v16 }
  0x2f   :  { %261 = vmatmul.f32.gmra.mxu2 %v132_v38  ;;  %374 = vmatmul.f32.gmra.mxu3 %v133_v39  ;;  %58 = vst.msk [vmem:[#allocation2 + $0xc0] sm:$0xff] %vm33_vm0, %v800_v16  ;;  %v67_v39 = vld [vmem:[#allocation2 + $0x8] sm:$0xff] }
  0x30   :  { %59 = vst.msk [vmem:[#allocation2 + $0xc8] sm:$0xff] %vm33_vm0, %v800_v16 }
  0x31   :  { %60 = vst.msk [vmem:[#allocation2 + $0xd0] sm:$0xff] %vm33_vm0, %v800_v16 }
  0x32   :  { %61 = vst.msk [vmem:[#allocation2 + $0xd8] sm:$0xff] %vm33_vm0, %v800_v16 }
  0x33   :  { %62 = vst.msk [vmem:[#allocation2 + $0xe0] sm:$0xff] %vm33_vm0, %v800_v16 }
  0x34   :  { %63 = vst.msk [vmem:[#allocation2 + $0xe8] sm:$0xff] %vm33_vm0, %v800_v16 }
  0x35   :  { %216 = vmatmul.f32.gmra.mxu0 %v102_v40  ;;  %64 = vst.msk [vmem:[#allocation2 + $0xf0] sm:$0xff] %vm33_vm0, %v800_v16 }
  0x36   :  { %329 = vmatmul.f32.gmra.mxu1 %v103_v41  ;;  %65 = vst.msk [vmem:[#allocation2 + $0xf8] sm:$0xff] %vm33_vm0, %v800_v16 }
  0x37   :  { %264 = vmatmul.f32.gmra.mxu2 %v134_v42  ;;  %377 = vmatmul.f32.gmra.mxu3 %v135_v43  ;;  %v82_v43 = vld [vmem:[#allocation2 + $0x80] sm:$0xff] }
  0x3d   :  { %219 = vmatmul.f32.gmra.mxu0 %v104_v44 }
  0x3e   :  { %332 = vmatmul.f32.gmra.mxu1 %v105_v45 }
  0x3f   :  { %267 = vmatmul.f32.gmra.mxu2 %v136_v46  ;;  %380 = vmatmul.f32.gmra.mxu3 %v137_v47 }
  0x45   :  { %222 = vmatmul.f32.gmra.mxu0 %v106_v48 }
  0x46   :  { %335 = vmatmul.f32.gmra.mxu1 %v107_v49 }
  0x47   :  { %270 = vmatmul.f32.gmra.mxu2 %v138_v50  ;;  %383 = vmatmul.f32.gmra.mxu3 %v139_v51  ;;  %v68_v50 = vld [vmem:[#allocation2 + $0x10] sm:$0xff] }
  0x4d   :  { %225 = vmatmul.f32.gmra.mxu0 %v108_v52 }
  0x4e   :  { %338 = vmatmul.f32.gmra.mxu1 %v109_v53 }
  0x4f   :  { %273 = vmatmul.f32.gmra.mxu2 %v140_v54  ;;  %386 = vmatmul.f32.gmra.mxu3 %v141_v55  ;;  %v83_v54 = vld [vmem:[#allocation2 + $0x88] sm:$0xff] }
  0x55   :  { %228 = vmatmul.f32.gmra.mxu0 %v110_v56 }
  0x56   :  { %341 = vmatmul.f32.gmra.mxu1 %v111_v57 }
  0x57   :  { %276 = vmatmul.f32.gmra.mxu2 %v142_v58  ;;  %389 = vmatmul.f32.gmra.mxu3 %v143_v59 }
  0x5d   :  { %231 = vmatmul.f32.gmra.mxu0 %v112_v60 }
  0x5e   :  { %344 = vmatmul.f32.gmra.mxu1 %v113_v61 }
  0x5f   :  { %279 = vmatmul.f32.gmra.mxu2 %v144_v62  ;;  %392 = vmatmul.f32.gmra.mxu3 %v145_v63 }
  0x65   :  { %234 = vmatmul.f32.gmra.mxu0 %v114_v0 }
  0x66   :  { %347 = vmatmul.f32.gmra.mxu1 %v115_v1 }
  0x67   :  { %282 = vmatmul.f32.gmra.mxu2 %v146_v2  ;;  %395 = vmatmul.f32.gmra.mxu3 %v147_v3 }
  0x6d   :  { %237 = vmatmul.f32.gmra.mxu0 %v116_v4 }
  0x6e   :  { %350 = vmatmul.f32.gmra.mxu1 %v117_v5  ;;  %v69_v5 = vld [vmem:[#allocation2 + $0x18] sm:$0xff] }
  0x6f   :  { %285 = vmatmul.f32.gmra.mxu2 %v148_v6  ;;  %398 = vmatmul.f32.gmra.mxu3 %v149_v7 }
  0x75   :  { %240 = vmatmul.f32.gmra.mxu0 %v118_v8 }
  0x76   :  { %353 = vmatmul.f32.gmra.mxu1 %v119_v9 }
  0x77   :  { %288 = vmatmul.f32.gmra.mxu2 %v150_v10  ;;  %401 = vmatmul.f32.gmra.mxu3 %v151_v11  ;;  %v84_v10 = vld [vmem:[#allocation2 + $0x90] sm:$0xff] }
  0x7d   :  { %243 = vmatmul.f32.gmra.mxu0 %v120_v12 }
  0x7e   :  { %356 = vmatmul.f32.gmra.mxu1 %v121_v13 }
  0x7f   :  { %291 = vmatmul.f32.gmra.mxu2 %v152_v14  ;;  %404 = vmatmul.f32.gmra.mxu3 %v153_v15 }
  0x85   :  { %246 = vmatmul.f32.gmra.mxu0 %v122_v17 }
  0x86   :  { %359 = vmatmul.f32.gmra.mxu1 %v123_v18 }
  0x87   :  { %294 = vmatmul.f32.gmra.mxu2 %v154_v19  ;;  %407 = vmatmul.f32.gmra.mxu3 %v155_v20 }
  0x8d   :  { %249 = vmatmul.f32.gmra.mxu0 %v124_v21 }
  0x8e   :  { %362 = vmatmul.f32.gmra.mxu1 %v125_v22 }
  0x8f   :  { %297 = vmatmul.f32.gmra.mxu2 %v156_v23  ;;  %410 = vmatmul.f32.gmra.mxu3 %v157_v24  ;;  %v70_v23 = vld [vmem:[#allocation2 + $0x20] sm:$0xff] }
  0x95   :  { %252 = vmatmul.f32.gmra.mxu0 %v126_v25 }
  0x96   :  { %365 = vmatmul.f32.gmra.mxu1 %v127_v26 }
  0x97   :  { %300 = vmatmul.f32.gmra.mxu2 %v158_v27  ;;  %413 = vmatmul.f32.gmra.mxu3 %v159_v28  ;;  %v85_v27 = vld [vmem:[#allocation2 + $0x98] sm:$0xff] }
  0x9d   :  { %255 = vmatmul.f32.gmra.mxu0 %v128_v29 }
  0x9e   :  { %368 = vmatmul.f32.gmra.mxu1 %v129_v30 }
  0x9f   :  { %303 = vmatmul.f32.gmra.mxu2 %v160_v31  ;;  %416 = vmatmul.f32.gmra.mxu3 %v161_v32 }
  0xa2   :  { %v211_v33 = vpop.f32.mrf.mxu0 }
  0xa3   :  { %v324_v35 = vpop.f32.mrf.mxu1 }
  0xa4   :  { %v325_v36 = vadd.f32 %v324_v35, %v211_v33 }
  0xa6   :  { %v420_v37 = vadd.f32 %v325_v36, %v66_v34 }
  0xa8   :  { %453 = vst.msk [vmem:[#allocation2] sm:$0xff] %vm33_vm0, %v420_v37 }
  0xaa   :  { %v214_v38 = vpop.f32.mrf.mxu0  ;;  %v259_v42 = vpop.f32.mrf.mxu2 }
  0xab   :  { %v327_v40 = vpop.f32.mrf.mxu1  ;;  %v372_v44 = vpop.f32.mrf.mxu3 }
  0xac   :  { %v328_v41 = vadd.f32 %v327_v40, %v214_v38  ;;  %v373_v45 = vadd.f32 %v372_v44, %v259_v42  ;;  %v86_v44 = vld [vmem:[#allocation2 + $0xa0] sm:$0xff] }
  0xae   :  { %v421_v46 = vadd.f32 %v328_v41, %v67_v39  ;;  %v436_v48 = vadd.f32 %v373_v45, %v82_v43  ;;  %v71_v39 = vld [vmem:[#allocation2 + $0x28] sm:$0xff] }
  0xaf   :  { %v488_v47 = vld [vmem:[#allocation2] sm:$0xff] }
  0xb0   :  { %520 = vst.msk [vmem:[%s1325_s2] sm:$0xff] %vm33_vm0, %v488_v47  ;;  %v621_v58 = vmul.f32 %v488_v47, %v488_v47  ;;  %v552_v61 = vsel %vm33_vm0, %v488_v47, 0.0 }
  0xb1   :  { %454 = vst.msk [vmem:[#allocation2 + $0x8] sm:$0xff] %vm33_vm0, %v421_v46 }
  0xb2   :  { %469 = vst.msk [vmem:[#allocation2 + $0x80] sm:$0xff] %vm33_vm0, %v436_v48  ;;  %v217_v49 = vpop.f32.mrf.mxu0  ;;  %v262_v53 = vpop.f32.mrf.mxu2  ;;  %v653_v2 = vsel %vm33_vm0, %v621_v58, 0.0 }
  0xb3   :  { %v330_v51 = vpop.f32.mrf.mxu1  ;;  %v375_v55 = vpop.f32.mrf.mxu3 }
  0xb4   :  { %v331_v52 = vadd.f32 %v330_v51, %v217_v49  ;;  %v376_v56 = vadd.f32 %v375_v55, %v262_v53 }
  0xb6   :  { %v422_v57 = vadd.f32 %v331_v52, %v68_v50  ;;  %v437_v59 = vadd.f32 %v376_v56, %v83_v54 }
  0xb8   :  { %v489_v60 = vld [vmem:[#allocation2 + $0x8] sm:$0xff]  ;;  %455 = vst.msk [vmem:[#allocation2 + $0x10] sm:$0xff] %vm33_vm0, %v422_v57  ;;  %v72_v57 = vld [vmem:[#allocation2 + $0x30] sm:$0xff] }
  0xb9   :  { %521 = vst.msk [vmem:[%s1325_s2 + $0x8] sm:$0xff] %vm33_vm0, %v489_v60  ;;  %v553_v62 = vsel %vm33_vm0, %v489_v60, 0.0  ;;  %v622_v63 = vmul.f32 %v489_v60, %v489_v60  ;;  %v966_v0 = vld [vmem:[#allocation2 + $0x80] sm:$0xff] }
  0xba   :  { %v554_v1 = vadd.f32 %v553_v62, %v552_v61  ;;  %536 = vst.msk [vmem:[%s1325_s2 + $0x80] sm:$0xff] %vm33_vm0, %v966_v0  ;;  %v220_v4 = vpop.f32.mrf.mxu0  ;;  %v265_v9 = vpop.f32.mrf.mxu2  ;;  %v87_v61 = vld [vmem:[#allocation2 + $0xa8] sm:$0xff] }
  0xbb   :  { %v654_v3 = vsel %vm33_vm0, %v622_v63, 0.0  ;;  %v333_v6 = vpop.f32.mrf.mxu1  ;;  %470 = vst.msk [vmem:[#allocation2 + $0x88] sm:$0xff] %vm33_vm0, %v437_v59  ;;  %v378_v11 = vpop.f32.mrf.mxu3 }
  0xbc   :  { %v655_v7 = vadd.f32 %v654_v3, %v653_v2  ;;  %v334_v8 = vadd.f32 %v333_v6, %v220_v4  ;;  %v379_v12 = vadd.f32 %v378_v11, %v265_v9  ;;  %v73_v6 = vld [vmem:[#allocation2 + $0x38] sm:$0xff] }
  0xbe   :  { %v423_v13 = vadd.f32 %v334_v8, %v69_v5  ;;  %v438_v15 = vadd.f32 %v379_v12, %v84_v10  ;;  %v88_v10 = vld [vmem:[#allocation2 + $0xb0] sm:$0xff] }
  0xbf   :  { %v490_v14 = vld [vmem:[#allocation2 + $0x10] sm:$0xff] }
  0xc0   :  { %522 = vst.msk [vmem:[%s1325_s2 + $0x10] sm:$0xff] %vm33_vm0, %v490_v14  ;;  %v555_v16 = vsel %vm33_vm0, %v490_v14, 0.0  ;;  %v623_v17 = vmul.f32 %v490_v14, %v490_v14 }
  0xc1   :  { %v556_v18 = vadd.f32 %v555_v16, %v554_v1  ;;  %456 = vst.msk [vmem:[#allocation2 + $0x18] sm:$0xff] %vm33_vm0, %v423_v13 }
  0xc2   :  { %v656_v19 = vsel %vm33_vm0, %v623_v17, 0.0  ;;  %v983_v20 = vld [vmem:[#allocation2 + $0x88] sm:$0xff]  ;;  %471 = vst.msk [vmem:[#allocation2 + $0x90] sm:$0xff] %vm33_vm0, %v438_v15  ;;  %v223_v22 = vpop.f32.mrf.mxu0  ;;  %v268_v26 = vpop.f32.mrf.mxu2 }
  0xc3   :  { %v657_v21 = vadd.f32 %v656_v19, %v655_v7  ;;  %v336_v24 = vpop.f32.mrf.mxu1  ;;  %537 = vst.msk [vmem:[%s1325_s2 + $0x88] sm:$0xff] %vm33_vm0, %v983_v20  ;;  %v381_v28 = vpop.f32.mrf.mxu3 }
  0xc4   :  { %v337_v25 = vadd.f32 %v336_v24, %v223_v22  ;;  %v382_v29 = vadd.f32 %v381_v28, %v268_v26 }
  0xc6   :  { %v424_v30 = vadd.f32 %v337_v25, %v70_v23  ;;  %v439_v31 = vadd.f32 %v382_v29, %v85_v27  ;;  %v89_v23 = vld [vmem:[#allocation2 + $0xb8] sm:$0xff] }
  0xc8   :  { %v491_v32 = vld [vmem:[#allocation2 + $0x18] sm:$0xff]  ;;  %457 = vst.msk [vmem:[#allocation2 + $0x20] sm:$0xff] %vm33_vm0, %v424_v30 }
  0xc9   :  { %523 = vst.msk [vmem:[%s1325_s2 + $0x18] sm:$0xff] %vm33_vm0, %v491_v32  ;;  %v557_v33 = vsel %vm33_vm0, %v491_v32, 0.0  ;;  %v624_v34 = vmul.f32 %v491_v32, %v491_v32  ;;  %v997_v35 = vld [vmem:[#allocation2 + $0x90] sm:$0xff] }
  0xca   :  { %v558_v36 = vadd.f32 %v557_v33, %v556_v18  ;;  %538 = vst.msk [vmem:[%s1325_s2 + $0x90] sm:$0xff] %vm33_vm0, %v997_v35  ;;  %v226_v38 = vpop.f32.mrf.mxu0  ;;  %v271_v43 = vpop.f32.mrf.mxu2  ;;  %v74_v18 = vld [vmem:[#allocation2 + $0x40] sm:$0xff] }
  0xcb   :  { %v658_v37 = vsel %vm33_vm0, %v624_v34, 0.0  ;;  %v339_v40 = vpop.f32.mrf.mxu1  ;;  %472 = vst.msk [vmem:[#allocation2 + $0x98] sm:$0xff] %vm33_vm0, %v439_v31  ;;  %v384_v45 = vpop.f32.mrf.mxu3  ;;  %v75_v31 = vld [vmem:[#allocation2 + $0x48] sm:$0xff] }
  0xcc   :  { %v659_v41 = vadd.f32 %v658_v37, %v657_v21  ;;  %v340_v42 = vadd.f32 %v339_v40, %v226_v38  ;;  %v385_v46 = vadd.f32 %v384_v45, %v271_v43 }
  0xce   :  { %v425_v47 = vadd.f32 %v340_v42, %v71_v39  ;;  %v440_v49 = vadd.f32 %v385_v46, %v86_v44  ;;  %v76_v44 = vld [vmem:[#allocation2 + $0x50] sm:$0xff] }
  0xcf   :  { %v492_v48 = vld [vmem:[#allocation2 + $0x20] sm:$0xff] }
  0xd0   :  { %524 = vst.msk [vmem:[%s1325_s2 + $0x20] sm:$0xff] %vm33_vm0, %v492_v48  ;;  %v559_v50 = vsel %vm33_vm0, %v492_v48, 0.0  ;;  %v625_v51 = vmul.f32 %v492_v48, %v492_v48  ;;  %v91_v48 = vld [vmem:[#allocation2 + $0xc8] sm:$0xff] }
  0xd1   :  { %v1011_v52 = vadd.f32 %v559_v50, %v558_v36  ;;  %458 = vst.msk [vmem:[#allocation2 + $0x28] sm:$0xff] %vm33_vm0, %v425_v47  ;;  %v90_v36 = vld [vmem:[#allocation2 + $0xc0] sm:$0xff] }
  0xd2   :  { %v660_v53 = vsel %vm33_vm0, %v625_v51, 0.0  ;;  %v1015_v54 = vld [vmem:[#allocation2 + $0x98] sm:$0xff]  ;;  %473 = vst.msk [vmem:[#allocation2 + $0xa0] sm:$0xff] %vm33_vm0, %v440_v49  ;;  %v229_v56 = vpop.f32.mrf.mxu0  ;;  %v274_v60 = vpop.f32.mrf.mxu2 }
  0xd3   :  { %v1018_v55 = vadd.f32 %v660_v53, %v659_v41  ;;  %v342_v58 = vpop.f32.mrf.mxu1  ;;  %539 = vst.msk [vmem:[%s1325_s2 + $0x98] sm:$0xff] %vm33_vm0, %v1015_v54  ;;  %v387_v62 = vpop.f32.mrf.mxu3 }
  0xd4   :  { %v343_v59 = vadd.f32 %v342_v58, %v229_v56  ;;  %v388_v63 = vadd.f32 %v387_v62, %v274_v60 }
  0xd6   :  { %v426_v1 = vadd.f32 %v343_v59, %v72_v57  ;;  %v441_v2 = vadd.f32 %v388_v63, %v87_v61  ;;  %v77_v59 = vld [vmem:[#allocation2 + $0x58] sm:$0xff]  ;;  %v92_v63 = vld [vmem:[#allocation2 + $0xd0] sm:$0xff] }
  0xd8   :  { %v1025_v3 = vld [vmem:[#allocation2 + $0x28] sm:$0xff]  ;;  %459 = vst.msk [vmem:[#allocation2 + $0x30] sm:$0xff] %vm33_vm0, %v426_v1 }
  0xd9   :  { %525 = vst.msk [vmem:[%s1325_s2 + $0x28] sm:$0xff] %vm33_vm0, %v1025_v3  ;;  %v1033_v4 = vld [vmem:[#allocation2 + $0xa0] sm:$0xff] }
  0xda   :  { %540 = vst.msk [vmem:[%s1325_s2 + $0xa0] sm:$0xff] %vm33_vm0, %v1033_v4  ;;  %v232_v5 = vpop.f32.mrf.mxu0  ;;  %v277_v9 = vpop.f32.mrf.mxu2 }
  0xdb   :  { %v345_v7 = vpop.f32.mrf.mxu1  ;;  %474 = vst.msk [vmem:[#allocation2 + $0xa8] sm:$0xff] %vm33_vm0, %v441_v2  ;;  %v390_v11 = vpop.f32.mrf.mxu3 }
  0xdc   :  { %v346_v8 = vadd.f32 %v345_v7, %v232_v5  ;;  %v391_v12 = vadd.f32 %v390_v11, %v277_v9 }
  0xde   :  { %v427_v13 = vadd.f32 %v346_v8, %v73_v6  ;;  %v442_v15 = vadd.f32 %v391_v12, %v88_v10  ;;  %v78_v10 = vld [vmem:[#allocation2 + $0x60] sm:$0xff] }
  0xdf   :  { %v1041_v14 = vld [vmem:[#allocation2 + $0x30] sm:$0xff] }
  0xe0   :  { %526 = vst.msk [vmem:[%s1325_s2 + $0x30] sm:$0xff] %vm33_vm0, %v1041_v14 }
  0xe1   :  { %460 = vst.msk [vmem:[#allocation2 + $0x38] sm:$0xff] %vm33_vm0, %v427_v13 }
  0xe2   :  { %v1049_v16 = vld [vmem:[#allocation2 + $0xa8] sm:$0xff]  ;;  %475 = vst.msk [vmem:[#allocation2 + $0xb0] sm:$0xff] %vm33_vm0, %v442_v15  ;;  %v235_v17 = vpop.f32.mrf.mxu0  ;;  %v280_v22 = vpop.f32.mrf.mxu2  ;;  %v93_v15 = vld [vmem:[#allocation2 + $0xd8] sm:$0xff] }
  0xe3   :  { %v348_v19 = vpop.f32.mrf.mxu1  ;;  %541 = vst.msk [vmem:[%s1325_s2 + $0xa8] sm:$0xff] %vm33_vm0, %v1049_v16  ;;  %v393_v24 = vpop.f32.mrf.mxu3 }
  0xe4   :  { %v349_v21 = vadd.f32 %v348_v19, %v235_v17  ;;  %v394_v25 = vadd.f32 %v393_v24, %v280_v22 }
  0xe6   :  { %v428_v26 = vadd.f32 %v349_v21, %v74_v18  ;;  %v443_v27 = vadd.f32 %v394_v25, %v89_v23  ;;  %v79_v25 = vld [vmem:[#allocation2 + $0x68] sm:$0xff] }
  0xe8   :  { %v1057_v28 = vld [vmem:[#allocation2 + $0x38] sm:$0xff]  ;;  %461 = vst.msk [vmem:[#allocation2 + $0x40] sm:$0xff] %vm33_vm0, %v428_v26 }
  0xe9   :  { %527 = vst.msk [vmem:[%s1325_s2 + $0x38] sm:$0xff] %vm33_vm0, %v1057_v28  ;;  %v1065_v29 = vld [vmem:[#allocation2 + $0xb0] sm:$0xff] }
  0xea   :  { %542 = vst.msk [vmem:[%s1325_s2 + $0xb0] sm:$0xff] %vm33_vm0, %v1065_v29  ;;  %v238_v30 = vpop.f32.mrf.mxu0  ;;  %v283_v34 = vpop.f32.mrf.mxu2 }
  0xeb   :  { %v351_v32 = vpop.f32.mrf.mxu1  ;;  %476 = vst.msk [vmem:[#allocation2 + $0xb8] sm:$0xff] %vm33_vm0, %v443_v27  ;;  %v396_v37 = vpop.f32.mrf.mxu3 }
  0xec   :  { %v352_v33 = vadd.f32 %v351_v32, %v238_v30  ;;  %v397_v38 = vadd.f32 %v396_v37, %v283_v34 }
  0xee   :  { %v429_v39 = vadd.f32 %v352_v33, %v75_v31  ;;  %v444_v41 = vadd.f32 %v397_v38, %v90_v36  ;;  %v94_v31 = vld [vmem:[#allocation2 + $0xe0] sm:$0xff]  ;;  %v626_v38 = vmul.f32 %v1025_v3, %v1025_v3 }
  0xef   :  { %v1073_v40 = vld [vmem:[#allocation2 + $0x40] sm:$0xff] }
  0xf0   :  { %528 = vst.msk [vmem:[%s1325_s2 + $0x40] sm:$0xff] %vm33_vm0, %v1073_v40 }
  0xf1   :  { %462 = vst.msk [vmem:[#allocation2 + $0x48] sm:$0xff] %vm33_vm0, %v429_v39 }
  0xf2   :  { %v1081_v42 = vld [vmem:[#allocation2 + $0xb8] sm:$0xff]  ;;  %477 = vst.msk [vmem:[#allocation2 + $0xc0] sm:$0xff] %vm33_vm0, %v444_v41  ;;  %v241_v43 = vpop.f32.mrf.mxu0  ;;  %v286_v47 = vpop.f32.mrf.mxu2  ;;  %v561_v41 = vsel %vm33_vm0, %v1025_v3, 0.0  ;;  %v563_v3 = vsel %vm33_vm0, %v1041_v14, 0.0 }
  0xf3   :  { %v354_v45 = vpop.f32.mrf.mxu1  ;;  %543 = vst.msk [vmem:[%s1325_s2 + $0xb8] sm:$0xff] %vm33_vm0, %v1081_v42  ;;  %v399_v49 = vpop.f32.mrf.mxu3 }
  0xf4   :  { %v355_v46 = vadd.f32 %v354_v45, %v241_v43  ;;  %v400_v50 = vadd.f32 %v399_v49, %v286_v47  ;;  %v627_v43 = vmul.f32 %v1041_v14, %v1041_v14  ;;  %v80_v45 = vld [vmem:[#allocation2 + $0x70] sm:$0xff]  ;;  %v95_v49 = vld [vmem:[#allocation2 + $0xe8] sm:$0xff] }
  0xf6   :  { %v430_v51 = vadd.f32 %v355_v46, %v76_v44  ;;  %v445_v53 = vadd.f32 %v400_v50, %v91_v48 }
  0xf8   :  { %v1089_v56 = vld [vmem:[#allocation2 + $0x48] sm:$0xff]  ;;  %463 = vst.msk [vmem:[#allocation2 + $0x50] sm:$0xff] %vm33_vm0, %v430_v51  ;;  %v662_v51 = vsel %vm33_vm0, %v626_v38, 0.0 }
  0xf9   :  { %529 = vst.msk [vmem:[%s1325_s2 + $0x48] sm:$0xff] %vm33_vm0, %v1089_v56  ;;  %v1097_v57 = vld [vmem:[#allocation2 + $0xc0] sm:$0xff] }
  0xfa   :  { %544 = vst.msk [vmem:[%s1325_s2 + $0xc0] sm:$0xff] %vm33_vm0, %v1097_v57  ;;  %v244_v58 = vpop.f32.mrf.mxu0  ;;  %v289_v62 = vpop.f32.mrf.mxu2 }
  0xfb   :  { %v357_v60 = vpop.f32.mrf.mxu1  ;;  %478 = vst.msk [vmem:[#allocation2 + $0xc8] sm:$0xff] %vm33_vm0, %v445_v53  ;;  %v402_v1 = vpop.f32.mrf.mxu3  ;;  %v628_v53 = vmul.f32 %v1057_v28, %v1057_v28 }
  0xfc   :  { %v358_v61 = vadd.f32 %v357_v60, %v244_v58  ;;  %v403_v2 = vadd.f32 %v402_v1, %v289_v62  ;;  %v565_v62 = vsel %vm33_vm0, %v1057_v28, 0.0 }
  0xfe   :  { %v431_v5 = vadd.f32 %v358_v61, %v77_v59  ;;  %v446_v7 = vadd.f32 %v403_v2, %v92_v63  ;;  %v562_v59 = vadd.f32 %v561_v41, %v1011_v52  ;;  %v664_v61 = vsel %vm33_vm0, %v627_v43, 0.0 }
  0xff   :  { %v1105_v6 = vld [vmem:[#allocation2 + $0x50] sm:$0xff]  ;;  %v629_v63 = vmul.f32 %v1073_v40, %v1073_v40  ;;  %v663_v2 = vadd.f32 %v662_v51, %v1018_v55  ;;  %v567_v52 = vsel %vm33_vm0, %v1073_v40, 0.0 }
 0x100   :  { %530 = vst.msk [vmem:[%s1325_s2 + $0x50] sm:$0xff] %vm33_vm0, %v1105_v6 }
 0x101   :  { %464 = vst.msk [vmem:[#allocation2 + $0x58] sm:$0xff] %vm33_vm0, %v431_v5  ;;  %v564_v5 = vadd.f32 %v563_v3, %v562_v59  ;;  %v665_v55 = vadd.f32 %v664_v61, %v663_v2  ;;  %v668_v40 = vsel %vm33_vm0, %v629_v63, 0.0 }
 0x102   :  { %v1113_v8 = vld [vmem:[#allocation2 + $0xc8] sm:$0xff]  ;;  %479 = vst.msk [vmem:[#allocation2 + $0xd0] sm:$0xff] %vm33_vm0, %v446_v7  ;;  %v247_v9 = vpop.f32.mrf.mxu0  ;;  %v292_v13 = vpop.f32.mrf.mxu2  ;;  %v666_v7 = vsel %vm33_vm0, %v628_v53, 0.0 }
 0x103   :  { %v360_v11 = vpop.f32.mrf.mxu1  ;;  %545 = vst.msk [vmem:[%s1325_s2 + $0xc8] sm:$0xff] %vm33_vm0, %v1113_v8  ;;  %v405_v17 = vpop.f32.mrf.mxu3 }
 0x104   :  { %v361_v12 = vadd.f32 %v360_v11, %v247_v9  ;;  %v406_v18 = vadd.f32 %v405_v17, %v292_v13  ;;  %v630_v9 = vmul.f32 %v1089_v56, %v1089_v56  ;;  %v569_v11 = vsel %vm33_vm0, %v1089_v56, 0.0 }
 0x106   :  { %v432_v19 = vadd.f32 %v361_v12, %v78_v10  ;;  %v447_v21 = vadd.f32 %v406_v18, %v93_v15  ;;  %v566_v10 = vadd.f32 %v565_v62, %v564_v5  ;;  %v631_v12 = vmul.f32 %v1105_v6, %v1105_v6  ;;  %v81_v15 = vld [vmem:[#allocation2 + $0x78] sm:$0xff] }
 0x107   :  { %v667_v18 = vadd.f32 %v666_v7, %v665_v55 }
 0x108   :  { %v1121_v22 = vld [vmem:[#allocation2 + $0x58] sm:$0xff]  ;;  %465 = vst.msk [vmem:[#allocation2 + $0x60] sm:$0xff] %vm33_vm0, %v432_v19  ;;  %v568_v19 = vadd.f32 %v567_v52, %v566_v10  ;;  %v637_v10 = vmul.f32 %v966_v0, %v966_v0 }
 0x109   :  { %531 = vst.msk [vmem:[%s1325_s2 + $0x58] sm:$0xff] %vm33_vm0, %v1121_v22  ;;  %v1129_v23 = vld [vmem:[#allocation2 + $0xd0] sm:$0xff]  ;;  %v632_v56 = vmul.f32 %v1121_v22, %v1121_v22  ;;  %v573_v38 = vsel %vm33_vm0, %v1121_v22, 0.0 }
 0x10a   :  { %546 = vst.msk [vmem:[%s1325_s2 + $0xd0] sm:$0xff] %vm33_vm0, %v1129_v23  ;;  %v250_v24 = vpop.f32.mrf.mxu0  ;;  %v295_v30 = vpop.f32.mrf.mxu2 }
 0x10b   :  { %v363_v26 = vpop.f32.mrf.mxu1  ;;  %480 = vst.msk [vmem:[#allocation2 + $0xd8] sm:$0xff] %vm33_vm0, %v447_v21  ;;  %v408_v32 = vpop.f32.mrf.mxu3 }
 0x10c   :  { %v364_v27 = vadd.f32 %v363_v26, %v250_v24  ;;  %v409_v33 = vadd.f32 %v408_v32, %v295_v30  ;;  %v571_v30 = vsel %vm33_vm0, %v1105_v6, 0.0  ;;  %v669_v32 = vadd.f32 %v668_v40, %v667_v18 }
 0x10d   :  { %v674_v6 = vsel %vm33_vm0, %v632_v56, 0.0  ;;  %v638_v18 = vmul.f32 %v983_v20, %v983_v20 }
 0x10e   :  { %v433_v34 = vadd.f32 %v364_v27, %v79_v25  ;;  %v448_v37 = vadd.f32 %v409_v33, %v94_v31  ;;  %v96_v25 = vld [vmem:[#allocation2 + $0xf0] sm:$0xff]  ;;  %v670_v27 = vsel %vm33_vm0, %v630_v9, 0.0  ;;  %v570_v33 = vadd.f32 %v569_v11, %v568_v19 }
 0x10f   :  { %v1137_v36 = vld [vmem:[#allocation2 + $0x60] sm:$0xff] }
 0x110   :  { %532 = vst.msk [vmem:[%s1325_s2 + $0x60] sm:$0xff] %vm33_vm0, %v1137_v36  ;;  %v633_v41 = vmul.f32 %v1137_v36, %v1137_v36 }
 0x111   :  { %466 = vst.msk [vmem:[#allocation2 + $0x68] sm:$0xff] %vm33_vm0, %v433_v34 }
 0x112   :  { %v1147_v39 = vld [vmem:[#allocation2 + $0xd8] sm:$0xff]  ;;  %481 = vst.msk [vmem:[#allocation2 + $0xe0] sm:$0xff] %vm33_vm0, %v448_v37  ;;  %v253_v44 = vpop.f32.mrf.mxu0  ;;  %v298_v48 = vpop.f32.mrf.mxu2  ;;  %v672_v37 = vsel %vm33_vm0, %v631_v12, 0.0  ;;  %v676_v51 = vsel %vm33_vm0, %v633_v41, 0.0 }
 0x113   :  { %v366_v46 = vpop.f32.mrf.mxu1  ;;  %547 = vst.msk [vmem:[%s1325_s2 + $0xd8] sm:$0xff] %vm33_vm0, %v1147_v39  ;;  %v411_v50 = vpop.f32.mrf.mxu3 }
 0x114   :  { %v367_v47 = vadd.f32 %v366_v46, %v253_v44  ;;  %v412_v58 = vadd.f32 %v411_v50, %v298_v48  ;;  %v572_v46 = vadd.f32 %v571_v30, %v570_v33 }
 0x116   :  { %v434_v60 = vadd.f32 %v367_v47, %v80_v45  ;;  %v449_v1 = vadd.f32 %v412_v58, %v95_v49  ;;  %v671_v45 = vadd.f32 %v670_v27, %v669_v32  ;;  %v575_v47 = vsel %vm33_vm0, %v1137_v36, 0.0 }
 0x117   :  { %v574_v49 = vadd.f32 %v573_v38, %v572_v46  ;;  %v639_v27 = vmul.f32 %v997_v35, %v997_v35  ;;  %v640_v32 = vmul.f32 %v1015_v54, %v1015_v54  ;;  %v641_v38 = vmul.f32 %v1033_v4, %v1033_v4 }
 0x118   :  { %v501_v14 = vld [vmem:[#allocation2 + $0x68] sm:$0xff]  ;;  %467 = vst.msk [vmem:[#allocation2 + $0x70] sm:$0xff] %vm33_vm0, %v434_v60  ;;  %v673_v22 = vadd.f32 %v672_v37, %v671_v45  ;;  %v97_v60 = vld [vmem:[#allocation2 + $0xf8] sm:$0xff]  ;;  %v642_v46 = vmul.f32 %v1049_v16, %v1049_v16 }
 0x119   :  { %533 = vst.msk [vmem:[%s1325_s2 + $0x68] sm:$0xff] %vm33_vm0, %v501_v14  ;;  %v1181_v28 = vld [vmem:[#allocation2 + $0xe0] sm:$0xff]  ;;  %v634_v48 = vmul.f32 %v501_v14, %v501_v14  ;;  %v577_v3 = vsel %vm33_vm0, %v501_v14, 0.0  ;;  %v576_v58 = vadd.f32 %v575_v47, %v574_v49  ;;  %v688_v37 = vsel %vm33_vm0, %v639_v27, 0.0 }
 0x11a   :  { %548 = vst.msk [vmem:[%s1325_s2 + $0xe0] sm:$0xff] %vm33_vm0, %v1181_v28  ;;  %v256_v13 = vpop.f32.mrf.mxu0  ;;  %v301_v24 = vpop.f32.mrf.mxu2  ;;  %v675_v36 = vadd.f32 %v674_v6, %v673_v22  ;;  %v690_v45 = vsel %vm33_vm0, %v640_v32, 0.0  ;;  %v692_v47 = vsel %vm33_vm0, %v641_v38, 0.0  ;;  %v643_v22 = vmul.f32 %v1065_v29, %v1065_v29 }
 0x11b   :  { %v369_v17 = vpop.f32.mrf.mxu1  ;;  %482 = vst.msk [vmem:[#allocation2 + $0xe8] sm:$0xff] %vm33_vm0, %v449_v1  ;;  %v414_v26 = vpop.f32.mrf.mxu3  ;;  %v678_v62 = vsel %vm33_vm0, %v634_v48, 0.0  ;;  %v578_v5 = vadd.f32 %v577_v3, %v576_v58  ;;  %v593_v48 = vsel %vm33_vm0, %v1049_v16, 0.0  ;;  %v595_v3 = vsel %vm33_vm0, %v1065_v29, 0.0 }
 0x11c   :  { %v370_v21 = vadd.f32 %v369_v17, %v256_v13  ;;  %v415_v31 = vadd.f32 %v414_v26, %v301_v24  ;;  %v677_v2 = vadd.f32 %v676_v51, %v675_v36  ;;  %v583_v17 = vsel %vm33_vm0, %v966_v0, 0.0 }
 0x11d   :  { %v585_v26 = vsel %vm33_vm0, %v983_v20, 0.0  ;;  %v686_v0 = vsel %vm33_vm0, %v638_v18, 0.0  ;;  %v589_v20 = vsel %vm33_vm0, %v1015_v54, 0.0  ;;  %v694_v51 = vsel %vm33_vm0, %v642_v46, 0.0 }
 0x11e   :  { %v435_v34 = vadd.f32 %v370_v21, %v81_v15  ;;  %v450_v44 = vadd.f32 %v415_v31, %v96_v25  ;;  %v679_v52 = vadd.f32 %v678_v62, %v677_v2  ;;  %v684_v25 = vsel %vm33_vm0, %v637_v10, 0.0 }
 0x11f   :  { %v502_v43 = vld [vmem:[#allocation2 + $0x70] sm:$0xff]  ;;  %v587_v31 = vsel %vm33_vm0, %v997_v35, 0.0  ;;  %v591_v35 = vsel %vm33_vm0, %v1033_v4, 0.0  ;;  %v597_v16 = vsel %vm33_vm0, %v1081_v42, 0.0  ;;  %v599_v29 = vsel %vm33_vm0, %v1097_v57, 0.0 }
 0x120   :  { %534 = vst.msk [vmem:[%s1325_s2 + $0x70] sm:$0xff] %vm33_vm0, %v502_v43  ;;  %v635_v53 = vmul.f32 %v502_v43, %v502_v43  ;;  %v579_v63 = vsel %vm33_vm0, %v502_v43, 0.0  ;;  %v648_v10 = vmul.f32 %v1147_v39, %v1147_v39 }
 0x121   :  { %468 = vst.msk [vmem:[#allocation2 + $0x78] sm:$0xff] %vm33_vm0, %v435_v34  ;;  %v580_v9 = vadd.f32 %v579_v63, %v578_v5 }
 0x122   :  { %v1212_v50 = vld [vmem:[#allocation2 + $0xe8] sm:$0xff]  ;;  %483 = vst.msk [vmem:[#allocation2 + $0xf0] sm:$0xff] %vm33_vm0, %v450_v44  ;;  %v304_v59 = vpop.f32.mrf.mxu2  ;;  %v680_v14 = vsel %vm33_vm0, %v635_v53, 0.0  ;;  %v644_v53 = vmul.f32 %v1081_v42, %v1081_v42  ;;  %v601_v42 = vsel %vm33_vm0, %v1113_v8, 0.0 }
 0x123   :  { %549 = vst.msk [vmem:[%s1325_s2 + $0xe8] sm:$0xff] %vm33_vm0, %v1212_v50  ;;  %v417_v61 = vpop.f32.mrf.mxu3  ;;  %v681_v13 = vadd.f32 %v680_v14, %v679_v52 }
 0x124   :  { %v418_v1 = vadd.f32 %v417_v61, %v304_v59  ;;  %v696_v59 = vsel %vm33_vm0, %v643_v22, 0.0  ;;  %v698_v63 = vsel %vm33_vm0, %v644_v53, 0.0 }
 0x126   :  { %v451_v7 = vadd.f32 %v418_v1, %v97_v60  ;;  %v645_v60 = vmul.f32 %v1097_v57, %v1097_v57  ;;  %v646_v1 = vmul.f32 %v1113_v8, %v1113_v8  ;;  %v603_v57 = vsel %vm33_vm0, %v1129_v23, 0.0 }
 0x127   :  { %v605_v8 = vsel %vm33_vm0, %v1147_v39, 0.0  ;;  %v609_v39 = vsel %vm33_vm0, %v1212_v50, 0.0 }
 0x128   :  { %v503_v55 = vld [vmem:[#allocation2 + $0x78] sm:$0xff]  ;;  %484 = vst.msk [vmem:[#allocation2 + $0xf8] sm:$0xff] %vm33_vm0, %v451_v7  ;;  %v700_v14 = vsel %vm33_vm0, %v645_v60, 0.0  ;;  %v647_v7 = vmul.f32 %v1129_v23, %v1129_v23  ;;  %v607_v23 = vsel %vm33_vm0, %v1181_v28, 0.0 }
 0x129   :  { %535 = vst.msk [vmem:[%s1325_s2 + $0x78] sm:$0xff] %vm33_vm0, %v503_v55  ;;  %v581_v40 = vsel %vm33_vm0, %v503_v55, 0.0  ;;  %v636_v11 = vmul.f32 %v503_v55, %v503_v55  ;;  %v1232_v12 = vld [vmem:[#allocation2 + $0xf0] sm:$0xff]  ;;  %v702_v55 = vsel %vm33_vm0, %v646_v1, 0.0 }
 0x12a   :  { %v582_v15 = vadd.f32 %v581_v40, %v580_v9  ;;  %550 = vst.msk [vmem:[%s1325_s2 + $0xf0] sm:$0xff] %vm33_vm0, %v1232_v12  ;;  %v651_v27 = vmul.f32 %v1232_v12, %v1232_v12 }
 0x12b   :  { %v682_v19 = vsel %vm33_vm0, %v636_v11, 0.0 }
 0x12c   :  { %v584_v21 = vadd.f32 %v583_v17, %v582_v15  ;;  %v683_v24 = vadd.f32 %v682_v19, %v681_v13  ;;  %v704_v13 = vsel %vm33_vm0, %v647_v7, 0.0  ;;  %v649_v15 = vmul.f32 %v1181_v28, %v1181_v28 }
 0x12d   :  { %v706_v19 = vsel %vm33_vm0, %v648_v10, 0.0  ;;  %v611_v28 = vsel %vm33_vm0, %v1232_v12, 0.0 }
 0x12e   :  { %v586_v30 = vadd.f32 %v585_v26, %v584_v21  ;;  %v685_v56 = vadd.f32 %v684_v25, %v683_v24  ;;  %v650_v21 = vmul.f32 %v1212_v50, %v1212_v50  ;;  %v708_v26 = vsel %vm33_vm0, %v649_v15, 0.0 }
 0x12f   :  { %v519_v44 = vld [vmem:[#allocation2 + $0xf8] sm:$0xff] }
 0x130   :  { %v588_v33 = vadd.f32 %v587_v31, %v586_v30  ;;  %v687_v34 = vadd.f32 %v686_v0, %v685_v56  ;;  %551 = vst.msk [vmem:[%s1325_s2 + $0xf8] sm:$0xff] %vm33_vm0, %v519_v44  ;;  %v652_v30 = vmul.f32 %v519_v44, %v519_v44  ;;  %v710_v31 = vsel %vm33_vm0, %v650_v21, 0.0 }
 0x131   :  { %v613_v32 = vsel %vm33_vm0, %v519_v44, 0.0 }
 0x132   :  { %v590_v41 = vadd.f32 %v589_v20, %v588_v33  ;;  %v689_v43 = vadd.f32 %v688_v37, %v687_v34  ;;  %v712_v37 = vsel %vm33_vm0, %v651_v27, 0.0  ;;  %v714_v20 = vsel %vm33_vm0, %v652_v30, 0.0 }
 0x134   :  { %v592_v54 = vadd.f32 %v591_v35, %v590_v41  ;;  %v691_v6 = vadd.f32 %v690_v45, %v689_v43 }
 0x136   :  { %v693_v49 = vadd.f32 %v692_v47, %v691_v6  ;;  %v594_v4 = vadd.f32 %v593_v48, %v592_v54 }
 0x138   :  { %v596_v36 = vadd.f32 %v595_v3, %v594_v4  ;;  %v695_v58 = vadd.f32 %v694_v51, %v693_v49 }
 0x13a   :  { %v598_v61 = vadd.f32 %v597_v16, %v596_v36  ;;  %v697_v62 = vadd.f32 %v696_v59, %v695_v58 }
 0x13c   :  { %v600_v2 = vadd.f32 %v599_v29, %v598_v61  ;;  %v699_v5 = vadd.f32 %v698_v63, %v697_v62 }
 0x13e   :  { %v602_v52 = vadd.f32 %v601_v42, %v600_v2  ;;  %v701_v9 = vadd.f32 %v700_v14, %v699_v5 }
 0x140   :  { %v604_v40 = vadd.f32 %v603_v57, %v602_v52  ;;  %v703_v11 = vadd.f32 %v702_v55, %v701_v9 }
 0x142   :  { %v606_v17 = vadd.f32 %v605_v8, %v604_v40  ;;  %v705_v18 = vadd.f32 %v704_v13, %v703_v11 }
 0x144   :  { %v707_v24 = vadd.f32 %v706_v19, %v705_v18  ;;  %v608_v25 = vadd.f32 %v607_v23, %v606_v17 }
 0x146   :  { %v709_v56 = vadd.f32 %v708_v26, %v707_v24  ;;  %v610_v0 = vadd.f32 %v609_v39, %v608_v25 }
 0x148   :  { %v711_v33 = vadd.f32 %v710_v31, %v709_v56  ;;  %v612_v34 = vadd.f32 %v611_v28, %v610_v0 }
 0x14a   :  { %v713_v50 = vadd.f32 %v712_v37, %v711_v33  ;;  %v614_v38 = vadd.f32 %v613_v32, %v612_v34 }
 0x14c   :  { %v615_v41 = vrot.slane %v614_v38, 4  ;;  %v715_v43 = vadd.f32 %v714_v20, %v713_v50 }
 0x14e   :  { %v616_v45 = vadd.f32 %v615_v41, %v614_v38  ;;  %v716_v35 = vrot.slane %v715_v43, 4 }
 0x150   :  { %v617_v46 = vrot.slane %v616_v45, 2  ;;  %v717_v54 = vadd.f32 %v716_v35, %v715_v43 }
 0x152   :  { %v618_v6 = vadd.f32 %v617_v46, %v616_v45  ;;  %v718_v47 = vrot.slane %v717_v54, 2 }
 0x154   :  { %v619_v48 = vrot.slane %v618_v6, 1  ;;  %v719_v12 = vadd.f32 %v718_v47, %v717_v54 }
 0x156   :  { %v720_v22 = vrot.slane %v719_v12, 1  ;;  %v620_v44 = vadd.f32 %v619_v48, %v618_v6 }
 0x158   :  { %v721_v49 = vadd.f32 %v720_v22, %v719_v12 }
 0x15a   :  { %v723_v4 = vsel %vm722_vm1, %v620_v44, %v721_v49 }
 0x15b   :  { %725 = vst.msk [vmem:[%s1326_s3] sm:$0x3] %vm724_vm2, %v723_v4 }
 0x15c   :  { %734 = vsyncpa [#allocation4], 1 }

</bundles_post_ra>
